<compile_context>
chip_gen: v6e
topology: v6e:2x2x1
jax: 0.10.0
libtpu: 0.0.40
codegen_flags: <defaults>
</compile_context>

<pallas_src>
import functools

import jax
import jax.numpy as jnp
import numpy as np
from jax.experimental import pallas as pl
from jax.experimental.pallas import tpu as pltpu


def _aspp_kernel(x_ref, w_ref, b_ref, o_ref, patch_ref, *,
                 K, dilation, h_tile, Wo_pad, Cin):
    # x_ref:     (1, Hp, Wp_ext, Cin) bf16   whole padded image of one batch element
    # w_ref:     (K*K*Cin, Cout_pad) bf16    BN-folded, im2col-ordered weights
    # b_ref:     (1, Cout_pad) f32           folded BN shift (bias)
    # o_ref:     (1, 1, h_tile*Wo_pad, Cout_pad)  flat, lane-dense output tile
    # patch_ref: (h_tile*Wo_pad, K*K*Cin) bf16 VMEM  flat im2col slab
    h0 = pl.program_id(1) * h_tile
    R = h_tile * Wo_pad

    # Build the flat im2col slab: K*K dilated tap windows -> adjacent channel groups.
    # Wo_pad is a multiple of 16, so the (h_tile, Wo_pad, Cin) -> (R, Cin) reshape is
    # tile-aligned (vreg restacking only, no relayout copy).
    for kh in range(K):
        for kw in range(K):
            t = kh * K + kw
            tap = x_ref[0,
                        pl.ds(h0 + kh * dilation, h_tile),
                        kw * dilation: kw * dilation + Wo_pad, :]
            patch_ref[:, t * Cin:(t + 1) * Cin] = tap.reshape(R, Cin)

    # One MXU matmul: bf16 operands, f32 accumulation.
    acc = jnp.dot(patch_ref[...], w_ref[...], preferred_element_type=jnp.float32)

    # Epilogue: folded-BN shift + ReLU, then a single unmasked lane-dense store.
    o_ref[0, 0] = jnp.maximum(acc + b_ref[...], 0.0).astype(o_ref.dtype)


def _pick_h_tile(Ho, Wo_pad, target_rows):
    """Largest divisor of Ho whose tile gives at most ~target_rows matmul rows."""
    best = 1
    for t in range(1, Ho + 1):
        if Ho % t == 0 and t * Wo_pad <= target_rows:
            best = t
    return best


def _padded_tile_bytes(shape, itemsize):
    """VMEM bytes of a tile after sublane/lane padding of the last two dims."""
    s = list(shape)
    sub = 8 * max(1, 4 // itemsize)          # 8 sublanes for f32, 16 for bf16 packing
    if len(s) >= 2:
        s[-2] = -(-s[-2] // sub) * sub
    s[-1] = -(-s[-1] // 128) * 128
    n = 1
    for d in s:
        n *= d
    return n * itemsize


def _vmem_capacity_bytes(default=64 * 2 ** 20):
    """Physical VMEM of the attached TPU; conservative (v7x per-TC) default."""
    try:
        info = pltpu.get_tpu_info()
        return int(getattr(info, "vmem_capacity_bytes", default))
    except Exception:
        return default


def aspp_forward(x_nchw, weight_oihw, gamma, beta, running_mean, running_var, *,
                 padding, dilation, eps=1e-5, h_tile=None):
    N, Cin, H, W = x_nchw.shape
    Cout, _, K, _ = weight_oihw.shape
    halo = dilation * (K - 1)
    Ho = H + 2 * padding - halo              # stride == 1 (true for ASPP)
    Wo = W + 2 * padding - halo
    Hp = H + 2 * padding

    # Pad the output width to a packed-sublane multiple so flattened (rows, reduce)
    # layouts are tile-aligned; extra columns read zero padding and are sliced off.
    Wo_pad = -(-Wo // 16) * 16
    Wp_ext = halo + Wo_pad                   # padded input width the kernel sees

    # ---- per-generation tiling / VMEM budget ----
    vmem_cap = _vmem_capacity_bytes()
    if vmem_cap >= 100 * 2 ** 20:            # v5e / v6e: 128 MiB VMEM
        target_rows, vmem_clamp = 1024, 96 * 2 ** 20
    else:                                    # v7x: 64 MiB per TensorCore
        target_rows, vmem_clamp = 512, 48 * 2 ** 20

    if h_tile is None:
        h_tile = _pick_h_tile(Ho, Wo_pad, target_rows)
    assert Ho % h_tile == 0, "h_tile must divide the output height"
    nH = Ho // h_tile
    R = h_tile * Wo_pad                      # matmul rows per grid step

    # ---- BatchNorm (inference) folding: scale into weights, shift as bias ----
    scale = (gamma / jnp.sqrt(running_var + eps)).astype(jnp.float32)   # (Cout,)
    shift = (beta - running_mean * scale).astype(jnp.float32)           # (Cout,)
    w_f = weight_oihw.astype(jnp.float32) * scale[:, None, None, None]  # OIHW, folded

    # ---- lane-dense, im2col-ordered bf16 weights; f32 bias ----
    lane = 256 if Cout > 128 else 128        # 256-wide MXU on v6e/v7x; 128 fits v5e
    Cout_pad = -(-Cout // lane) * lane
    KKC = K * K * Cin
    w2 = jnp.transpose(w_f, (2, 3, 1, 0)).reshape(KKC, Cout)            # (kh,kw,ci,co)
    w2 = jnp.pad(w2, ((0, 0), (0, Cout_pad - Cout))).astype(jnp.bfloat16)
    b2 = jnp.pad(shift, (0, Cout_pad - Cout)).reshape(1, Cout_pad)

    # ---- layout plumbing: NCHW -> NHWC, zero pad (incl. W alignment pad), bf16 ----
    x = jnp.transpose(x_nchw, (0, 2, 3, 1))
    x_pad = jnp.pad(x, ((0, 0), (padding, padding),
                        (padding, padding + (Wo_pad - Wo)), (0, 0)))
    x_pad = x_pad.astype(jnp.bfloat16)       # (N, Hp, Wp_ext, Cin)

    # ---- VMEM budget: 2x(in + out + weights + bias) + patch scratch, +20% headroom ----
    est = (2 * _padded_tile_bytes((1, Hp, Wp_ext, Cin), 2)
           + 2 * _padded_tile_bytes((KKC, Cout_pad), 2)
           + 2 * _padded_tile_bytes((1, Cout_pad), 4)
           + 2 * _padded_tile_bytes((1, 1, R, Cout_pad), 4)
           + _padded_tile_bytes((R, KKC), 2))
    vmem_limit_bytes = int(min(vmem_clamp, max(4 * 2 ** 20, int(est * 1.2))))

    kernel = functools.partial(_aspp_kernel, K=K, dilation=dilation,
                               h_tile=h_tile, Wo_pad=Wo_pad, Cin=Cin)

    out = pl.pallas_call(
        kernel,
        out_shape=jax.ShapeDtypeStruct((N, nH, R, Cout_pad), x_nchw.dtype),
        grid_spec=pltpu.PrefetchScalarGridSpec(
            num_scalar_prefetch=0,
            grid=(N, nH),
            in_specs=[
                # Whole padded image of one batch element: block index is constant
                # across the h axis, so it is DMA'd once per batch element (no
                # HBM-materialized halo windows, no halo re-reads).
                pl.BlockSpec((1, Hp, Wp_ext, Cin), lambda n, h: (n, 0, 0, 0)),
                pl.BlockSpec((KKC, Cout_pad), lambda n, h: (0, 0)),
                pl.BlockSpec((1, Cout_pad), lambda n, h: (0, 0)),
            ],
            out_specs=pl.BlockSpec((1, 1, R, Cout_pad), lambda n, h: (n, h, 0, 0)),
            scratch_shapes=[pltpu.VMEM((R, KKC), jnp.bfloat16)],
        ),
        compiler_params=pltpu.CompilerParams(
            dimension_semantics=("parallel", "parallel"),
            vmem_limit_bytes=vmem_limit_bytes),
    )(x_pad, w2, b2)

    # Un-flatten spatial dims, drop the W / Cout padding, back to NCHW.
    out = out.reshape(N, nH, h_tile, Wo_pad, Cout_pad)
    out = out.reshape(N, Ho, Wo_pad, Cout_pad)[:, :, :Wo, :Cout]
    return jnp.transpose(out, (0, 3, 1, 2))


def _reference(x_nchw, weight_oihw, gamma, beta, running_mean, running_var, *,
               padding, dilation, eps=1e-5):
    conv = jax.lax.conv_general_dilated(
        x_nchw, weight_oihw, window_strides=(1, 1),
        padding=((padding, padding), (padding, padding)),
        rhs_dilation=(dilation, dilation),
        dimension_numbers=('NCHW', 'OIHW', 'NCHW'))
    m = running_mean[None, :, None, None]
    v = running_var[None, :, None, None]
    g = gamma[None, :, None, None]
    b = beta[None, :, None, None]
    y = (conv - m) / jnp.sqrt(v + eps) * g + b
    return jnp.maximum(y, 0.0)


if __name__ == "__main__":
    # _ASPPModule(inplanes=4, planes=8, kernel_size=3, padding=2, dilation=2, BatchNorm)
    N, Cin, H, W = 2, 4, 16, 16
    Cout, K, padding, dilation = 8, 3, 2, 2

    key = jax.random.PRNGKey(0)
    kx, kw, kg, kb, km, kv = jax.random.split(key, 6)

    x = jax.random.normal(kx, (N, Cin, H, W), jnp.float32)
    # Kaiming-normal-ish deterministic init for the conv weight (bias=False).
    fan_in = Cin * K * K
    weight = jax.random.normal(kw, (Cout, Cin, K, K), jnp.float32) * jnp.sqrt(2.0 / fan_in)
    # BatchNorm (inference mode) parameters / running stats.
    gamma = 1.0 + 0.1 * jax.random.normal(kg, (Cout,), jnp.float32)
    beta = 0.1 * jax.random.normal(kb, (Cout,), jnp.float32)
    running_mean = 0.1 * jax.random.normal(km, (Cout,), jnp.float32)
    running_var = jnp.abs(1.0 + 0.1 * jax.random.normal(kv, (Cout,), jnp.float32))

    # h_tile=8 -> grid (N=2, nH=2): exercises the in-kernel halo'd H slicing and both
    # parallel grid axes.  bf16 operands -> relaxed tolerance vs the f32 reference.
    out = aspp_forward(x, weight, gamma, beta, running_mean, running_var,
                       padding=padding, dilation=dilation, h_tile=8)
    out = jax.block_until_ready(out)
    ref = _reference(x, weight, gamma, beta, running_mean, running_var,
                     padding=padding, dilation=dilation)
    np.testing.assert_allclose(np.asarray(out), np.asarray(ref), rtol=2e-2, atol=2e-2)

    # Second case with Wo not a multiple of 8 (W=14 -> Wo=14, padded to 16 in-kernel):
    # exercises the W-alignment pad + wrapper-side slice-off path.
    x2 = jax.random.normal(jax.random.PRNGKey(1), (N, Cin, H, 14), jnp.float32)
    out2 = aspp_forward(x2, weight, gamma, beta, running_mean, running_var,
                        padding=padding, dilation=dilation, h_tile=8)
    out2 = jax.block_until_ready(out2)
    ref2 = _reference(x2, weight, gamma, beta, running_mean, running_var,
                      padding=padding, dilation=dilation)
    np.testing.assert_allclose(np.asarray(out2), np.asarray(ref2), rtol=2e-2, atol=2e-2)

    print("KERNEL_OK")
</pallas_src>

<mosaic_0001>
module attributes {stable_mosaic.version = 11 : i64} {
  func.func @_aspp_kernel(%arg0: i32, %arg1: i32, %arg2: memref<1x20x20x4xbf16, #tpu.memory_space<vmem>>, %arg3: memref<36x128xbf16, #tpu.memory_space<vmem>>, %arg4: memref<1x128xf32, #tpu.memory_space<vmem>>, %arg5: memref<1x1x128x128xf32, #tpu.memory_space<vmem>>, %arg6: memref<128x36xbf16, #tpu.memory_space<vmem>>) attributes {dimension_semantics = [#tpu.dimension_semantics<parallel>, #tpu.dimension_semantics<parallel>], iteration_bounds = array<i64: 2, 2>, scalar_prefetch = 0 : i64, scratch_operands = 1 : i64, tpu.core_type = #tpu.core_type<tc>, window_params = [{transform_indices = @transform_0, window_bounds = array<i64: 1, 20, 20, 4>}, {pipeline_mode = #tpu.pipeline_mode<synchronous>, transform_indices = @transform_1, window_bounds = array<i64: 36, 128>}, {pipeline_mode = #tpu.pipeline_mode<synchronous>, transform_indices = @transform_2, window_bounds = array<i64: 1, 128>}, {transform_indices = @transform_3, window_bounds = array<i64: 1, 1, 128, 128>}]} {
    %c8_i32 = arith.constant 8 : i32
    %0 = arith.muli %arg1, %c8_i32 : i32
    %c0_i32 = arith.constant 0 : i32
    %1 = arith.addi %0, %c0_i32 : i32
    %c0 = arith.constant 0 : index
    %2 = arith.index_cast %1 : i32 to index
    %c0_0 = arith.constant 0 : index
    %c0_1 = arith.constant 0 : index
    %3 = vector.load %arg2[%c0, %2, %c0_0, %c0_1] : memref<1x20x20x4xbf16, #tpu.memory_space<vmem>>, vector<1x8x16x4xbf16>
    %4 = vector.shape_cast %3 : vector<1x8x16x4xbf16> to vector<8x16x4xbf16>
    %5 = vector.shape_cast %4 : vector<8x16x4xbf16> to vector<128x4xbf16>
    %c0_2 = arith.constant 0 : index
    %c0_3 = arith.constant 0 : index
    %6 = vector.load %arg6[%c0_2, %c0_3] : memref<128x36xbf16, #tpu.memory_space<vmem>>, vector<128x4xbf16>
    tpu.vector_store %arg6[%c0_2, %c0_3], %5 {strides = array<i32>} : memref<128x36xbf16, #tpu.memory_space<vmem>>, vector<128x4xbf16>,
    %c0_i32_4 = arith.constant 0 : i32
    %7 = arith.addi %0, %c0_i32_4 : i32
    %c0_5 = arith.constant 0 : index
    %8 = arith.index_cast %7 : i32 to index
    %c2 = arith.constant 2 : index
    %c0_6 = arith.constant 0 : index
    %9 = vector.load %arg2[%c0_5, %8, %c2, %c0_6] : memref<1x20x20x4xbf16, #tpu.memory_space<vmem>>, vector<1x8x16x4xbf16>
    %10 = vector.shape_cast %9 : vector<1x8x16x4xbf16> to vector<8x16x4xbf16>
    %11 = vector.shape_cast %10 : vector<8x16x4xbf16> to vector<128x4xbf16>
    %c0_7 = arith.constant 0 : index
    %c4 = arith.constant 4 : index
    %12 = vector.load %arg6[%c0_7, %c4] : memref<128x36xbf16, #tpu.memory_space<vmem>>, vector<128x4xbf16>
    tpu.vector_store %arg6[%c0_7, %c4], %11 {strides = array<i32>} : memref<128x36xbf16, #tpu.memory_space<vmem>>, vector<128x4xbf16>,
    %c0_i32_8 = arith.constant 0 : i32
    %13 = arith.addi %0, %c0_i32_8 : i32
    %c0_9 = arith.constant 0 : index
    %14 = arith.index_cast %13 : i32 to index
    %c4_10 = arith.constant 4 : index
    %c0_11 = arith.constant 0 : index
    %15 = vector.load %arg2[%c0_9, %14, %c4_10, %c0_11] : memref<1x20x20x4xbf16, #tpu.memory_space<vmem>>, vector<1x8x16x4xbf16>
    %16 = vector.shape_cast %15 : vector<1x8x16x4xbf16> to vector<8x16x4xbf16>
    %17 = vector.shape_cast %16 : vector<8x16x4xbf16> to vector<128x4xbf16>
    %c0_12 = arith.constant 0 : index
    %c8 = arith.constant 8 : index
    %18 = vector.load %arg6[%c0_12, %c8] : memref<128x36xbf16, #tpu.memory_space<vmem>>, vector<128x4xbf16>
    tpu.vector_store %arg6[%c0_12, %c8], %17 {strides = array<i32>} : memref<128x36xbf16, #tpu.memory_space<vmem>>, vector<128x4xbf16>,
    %c2_i32 = arith.constant 2 : i32
    %19 = arith.addi %0, %c2_i32 : i32
    %c0_13 = arith.constant 0 : index
    %20 = arith.index_cast %19 : i32 to index
    %c0_14 = arith.constant 0 : index
    %c0_15 = arith.constant 0 : index
    %21 = vector.load %arg2[%c0_13, %20, %c0_14, %c0_15] : memref<1x20x20x4xbf16, #tpu.memory_space<vmem>>, vector<1x8x16x4xbf16>
    %22 = vector.shape_cast %21 : vector<1x8x16x4xbf16> to vector<8x16x4xbf16>
    %23 = vector.shape_cast %22 : vector<8x16x4xbf16> to vector<128x4xbf16>
    %c0_16 = arith.constant 0 : index
    %c12 = arith.constant 12 : index
    %24 = vector.load %arg6[%c0_16, %c12] : memref<128x36xbf16, #tpu.memory_space<vmem>>, vector<128x4xbf16>
    tpu.vector_store %arg6[%c0_16, %c12], %23 {strides = array<i32>} : memref<128x36xbf16, #tpu.memory_space<vmem>>, vector<128x4xbf16>,
    %c2_i32_17 = arith.constant 2 : i32
    %25 = arith.addi %0, %c2_i32_17 : i32
    %c0_18 = arith.constant 0 : index
    %26 = arith.index_cast %25 : i32 to index
    %c2_19 = arith.constant 2 : index
    %c0_20 = arith.constant 0 : index
    %27 = vector.load %arg2[%c0_18, %26, %c2_19, %c0_20] : memref<1x20x20x4xbf16, #tpu.memory_space<vmem>>, vector<1x8x16x4xbf16>
    %28 = vector.shape_cast %27 : vector<1x8x16x4xbf16> to vector<8x16x4xbf16>
    %29 = vector.shape_cast %28 : vector<8x16x4xbf16> to vector<128x4xbf16>
    %c0_21 = arith.constant 0 : index
    %c16 = arith.constant 16 : index
    %30 = vector.load %arg6[%c0_21, %c16] : memref<128x36xbf16, #tpu.memory_space<vmem>>, vector<128x4xbf16>
    tpu.vector_store %arg6[%c0_21, %c16], %29 {strides = array<i32>} : memref<128x36xbf16, #tpu.memory_space<vmem>>, vector<128x4xbf16>,
    %c2_i32_22 = arith.constant 2 : i32
    %31 = arith.addi %0, %c2_i32_22 : i32
    %c0_23 = arith.constant 0 : index
    %32 = arith.index_cast %31 : i32 to index
    %c4_24 = arith.constant 4 : index
    %c0_25 = arith.constant 0 : index
    %33 = vector.load %arg2[%c0_23, %32, %c4_24, %c0_25] : memref<1x20x20x4xbf16, #tpu.memory_space<vmem>>, vector<1x8x16x4xbf16>
    %34 = vector.shape_cast %33 : vector<1x8x16x4xbf16> to vector<8x16x4xbf16>
    %35 = vector.shape_cast %34 : vector<8x16x4xbf16> to vector<128x4xbf16>
    %c0_26 = arith.constant 0 : index
    %c20 = arith.constant 20 : index
    %36 = vector.load %arg6[%c0_26, %c20] : memref<128x36xbf16, #tpu.memory_space<vmem>>, vector<128x4xbf16>
    tpu.vector_store %arg6[%c0_26, %c20], %35 {strides = array<i32>} : memref<128x36xbf16, #tpu.memory_space<vmem>>, vector<128x4xbf16>,
    %c4_i32 = arith.constant 4 : i32
    %37 = arith.addi %0, %c4_i32 : i32
    %c0_27 = arith.constant 0 : index
    %38 = arith.index_cast %37 : i32 to index
    %c0_28 = arith.constant 0 : index
    %c0_29 = arith.constant 0 : index
    %39 = vector.load %arg2[%c0_27, %38, %c0_28, %c0_29] : memref<1x20x20x4xbf16, #tpu.memory_space<vmem>>, vector<1x8x16x4xbf16>
    %40 = vector.shape_cast %39 : vector<1x8x16x4xbf16> to vector<8x16x4xbf16>
    %41 = vector.shape_cast %40 : vector<8x16x4xbf16> to vector<128x4xbf16>
    %c0_30 = arith.constant 0 : index
    %c24 = arith.constant 24 : index
    %42 = vector.load %arg6[%c0_30, %c24] : memref<128x36xbf16, #tpu.memory_space<vmem>>, vector<128x4xbf16>
    tpu.vector_store %arg6[%c0_30, %c24], %41 {strides = array<i32>} : memref<128x36xbf16, #tpu.memory_space<vmem>>, vector<128x4xbf16>,
    %c4_i32_31 = arith.constant 4 : i32
    %43 = arith.addi %0, %c4_i32_31 : i32
    %c0_32 = arith.constant 0 : index
    %44 = arith.index_cast %43 : i32 to index
    %c2_33 = arith.constant 2 : index
    %c0_34 = arith.constant 0 : index
    %45 = vector.load %arg2[%c0_32, %44, %c2_33, %c0_34] : memref<1x20x20x4xbf16, #tpu.memory_space<vmem>>, vector<1x8x16x4xbf16>
    %46 = vector.shape_cast %45 : vector<1x8x16x4xbf16> to vector<8x16x4xbf16>
    %47 = vector.shape_cast %46 : vector<8x16x4xbf16> to vector<128x4xbf16>
    %c0_35 = arith.constant 0 : index
    %c28 = arith.constant 28 : index
    %48 = vector.load %arg6[%c0_35, %c28] : memref<128x36xbf16, #tpu.memory_space<vmem>>, vector<128x4xbf16>
    tpu.vector_store %arg6[%c0_35, %c28], %47 {strides = array<i32>} : memref<128x36xbf16, #tpu.memory_space<vmem>>, vector<128x4xbf16>,
    %c4_i32_36 = arith.constant 4 : i32
    %49 = arith.addi %0, %c4_i32_36 : i32
    %c0_37 = arith.constant 0 : index
    %50 = arith.index_cast %49 : i32 to index
    %c4_38 = arith.constant 4 : index
    %c0_39 = arith.constant 0 : index
    %51 = vector.load %arg2[%c0_37, %50, %c4_38, %c0_39] : memref<1x20x20x4xbf16, #tpu.memory_space<vmem>>, vector<1x8x16x4xbf16>
    %52 = vector.shape_cast %51 : vector<1x8x16x4xbf16> to vector<8x16x4xbf16>
    %53 = vector.shape_cast %52 : vector<8x16x4xbf16> to vector<128x4xbf16>
    %c0_40 = arith.constant 0 : index
    %c32 = arith.constant 32 : index
    %54 = vector.load %arg6[%c0_40, %c32] : memref<128x36xbf16, #tpu.memory_space<vmem>>, vector<128x4xbf16>
    tpu.vector_store %arg6[%c0_40, %c32], %53 {strides = array<i32>} : memref<128x36xbf16, #tpu.memory_space<vmem>>, vector<128x4xbf16>,
    %c0_41 = arith.constant 0 : index
    %c0_42 = arith.constant 0 : index
    %55 = vector.load %arg6[%c0_41, %c0_42] : memref<128x36xbf16, #tpu.memory_space<vmem>>, vector<128x36xbf16>
    %c0_43 = arith.constant 0 : index
    %c0_44 = arith.constant 0 : index
    %56 = vector.load %arg3[%c0_43, %c0_44] : memref<36x128xbf16, #tpu.memory_space<vmem>>, vector<36x128xbf16>
    %cst = arith.constant dense<0.000000e+00> : vector<128x128xf32>
    %57 = tpu.matmul %55, %56, %cst {dimension_numbers = #tpu.dot_dimension_numbers<[1], [0], [0], [1], [0, 0, 1, 1], [], []>} : vector<128x36xbf16>, vector<36x128xbf16>, vector<128x128xf32> -> vector<128x128xf32>
    %c0_45 = arith.constant 0 : index
    %c0_46 = arith.constant 0 : index
    %58 = vector.load %arg4[%c0_45, %c0_46] : memref<1x128xf32, #tpu.memory_space<vmem>>, vector<1x128xf32>
    %59 = vector.broadcast %58 : vector<1x128xf32> to vector<128x128xf32>
    %60 = arith.addf %57, %59 : vector<128x128xf32>
    %cst_47 = arith.constant 0.000000e+00 : f32
    %61 = vector.broadcast %cst_47 : f32 to vector<128x128xf32>
    %62 = arith.maximumf %60, %61 : vector<128x128xf32>
    %c0_48 = arith.constant 0 : index
    %c0_49 = arith.constant 0 : index
    %c0_50 = arith.constant 0 : index
    %c0_51 = arith.constant 0 : index
    %63 = vector.load %arg5[%c0_48, %c0_49, %c0_50, %c0_51] : memref<1x1x128x128xf32, #tpu.memory_space<vmem>>, vector<1x1x128x128xf32>
    %64 = vector.shape_cast %63 : vector<1x1x128x128xf32> to vector<128x128xf32>
    %65 = vector.shape_cast %62 : vector<128x128xf32> to vector<1x1x128x128xf32>
    tpu.vector_store %arg5[%c0_48, %c0_49, %c0_50, %c0_51], %65 {strides = array<i32>} : memref<1x1x128x128xf32, #tpu.memory_space<vmem>>, vector<1x1x128x128xf32>,
    return
  }
  func.func @transform_0(%arg0: i32, %arg1: i32) -> (i32, i32, i32, i32) {
    %c0_i32 = arith.constant 0 : i32
    %c0_i32_0 = arith.constant 0 : i32
    %c0_i32_1 = arith.constant 0 : i32
    %c0_i32_2 = arith.constant 0 : i32
    return %arg0, %c0_i32, %c0_i32_0, %c0_i32_1 : i32, i32, i32, i32
  }
  func.func @transform_1(%arg0: i32, %arg1: i32) -> (i32, i32) {
    %c0_i32 = arith.constant 0 : i32
    %c0_i32_0 = arith.constant 0 : i32
    %c0_i32_1 = arith.constant 0 : i32
    return %c0_i32, %c0_i32_0 : i32, i32
  }
  func.func @transform_2(%arg0: i32, %arg1: i32) -> (i32, i32) {
    %c0_i32 = arith.constant 0 : i32
    %c0_i32_0 = arith.constant 0 : i32
    %c0_i32_1 = arith.constant 0 : i32
    return %c0_i32, %c0_i32_0 : i32, i32
  }
  func.func @transform_3(%arg0: i32, %arg1: i32) -> (i32, i32, i32, i32) {
    %c0_i32 = arith.constant 0 : i32
    %c0_i32_0 = arith.constant 0 : i32
    %c0_i32_1 = arith.constant 0 : i32
    return %arg0, %arg1, %c0_i32, %c0_i32_0 : i32, i32, i32, i32
  }
}

</mosaic_0001>

<bundles_post_ra>
// kernel: tpu_custom_call.1
= control target key start
LH: loop header
LB: loop body
LE: loop exit
PB: predicated region body
PF: predicated region fallthrough
CT: control target
= control target key end

     0   :  { %8 = vsyncpa [#allocation4], 0  ;;  %s3136_s0 = inlined_call_operand.vmem [shape: bf16[2,20,20,4], index: 0, kind: input, shape index: {}]   ;;  %s3137_s1 = inlined_call_operand.vmem [shape: bf16[36,128], index: 1, kind: input, shape index: {}]   ;;  %s3138_s2 = inlined_call_operand.vmem [shape: f32[1,128], index: 2, kind: input, shape index: {}]   ;;  %s3139_s3 = inlined_call_operand.hbm [shape: f32[2,2,128,128], index: 3, kind: output, shape index: {}]  }
   0x1   :  { %10 = vsyncpa [#allocation4 + $0x1], 0  ;;  %s2260_s12 = smov 0   ;;  %s2262_s13 = smov 0  }
   0x2   :  { %s2264_s14 = smov 0   ;;  %s2266_s15 = smov 0  }
   0x3   :  { %s2268_s16 = smov 0   ;;  %s2270_s17 = smov 0  }
   0x4   :  { %s2272_s18 = smov 0   ;;  %s2274_s19 = smov 0  }
   0x5 LB: > { %s1786_s20 = sadd.s32 4294967295, %s2228_s19   ;;  %s1787_s21 = sadd.s32 4294967294, %s2228_s19   ;;  %s2228_s19 = sphi %s2274_s19, %s16_s19   ;;  %s2224_s18 = sphi %s2272_s18, %s3152_s18   ;;  %s2220_s17 = sphi %s2270_s17, %s3151_s17   ;;  %s2216_s16 = sphi %s2268_s16, %s3150_s16   ;;  %s2212_s15 = sphi %s2266_s15, %s3149_s15   ;;  %s2208_s14 = sphi %s2264_s14, %s3148_s14   ;;  %s2204_s13 = sphi %s2262_s13, %s3147_s13   ;;  %s2200_s12 = sphi %s2260_s12, %s3146_s12  }
   0x6   : > { %s25_s22 = sadd.s32 1, %s2220_s17  ;;  %s28_s23 = sadd.s32 1, %s2224_s18 }
   0x7   : > { %p26_p0 = scmp.ge.s32.totalorder %s25_s22, 2  ;;  %p115_p1 = scmp.ne.s32.totalorder %s2208_s14, %s2204_s13 }
   0x8   : > { %p116_p2 = scmp.eq.s32.totalorder %s1786_s20, 3  ;;  %p121_p5 = scmp.ne.s32.totalorder %s2204_s13, %s2200_s12 }
   0x9   : > { %s3154_s22 = smov (%p26_p0, %s25_s22), 0  ;;  %s3156_s23 = smov (!%p26_p0, %s28_s23), %s2224_s18 }
   0xa   : > { %s101_s24 = ssub.s32 %s2220_s17, %s3154_s22  ;;  %p2311_p3 = por %p116_p2, %p115_p1 }
   0xb   : > { %p30_p4 = scmp.ge.s32.totalorder %s3156_s23, 2  ;;  %p122_p6 = scmp.eq.s32.totalorder %s1787_s21, 3 }
   0xc   : > { %p1790_p7 = scmp.ge.s32.totalorder %s2228_s19, 1  ;;  %p154_p9 = scmp.lt.s32.totalorder %s2228_s19, 5 }
   0xd   : > { %s3158_s23 = smov (%p30_p4, %s3156_s23), 0  ;;  %p2320_p8 = por %p122_p6, %p121_p5 }
   0xe   : > { %s100_s27 = ssub.s32 %s2224_s18, %s3158_s23  ;;  %s105_s28 = sadd.s32 1, %s2208_s14 }
   0xf   : > { %s102_s29 = sor.u32 %s101_s24, %s100_s27  ;;  %p155_p10 = pnand %p1790_p7, %p154_p9 }
  0x10   : > { %p103_p11 = scmp.eq.s32.totalorder %s102_s29, 0  ;;  %p178_p12 = scmp.lt.s32.totalorder (!%p155_p10), %s2216_s16, 1 }
  0x11   : > { %158 = sbr.rel (%p155_p10) target bundleno = 625 (0x271), region = 32  ;;  %s2230_s11 = smov (!%p155_p10), 4  }
  0x12   : > { %s2329_s30 = scalar_select %p103_p11, %s2208_s14, %s105_s28  }
  0x13   : > { %s2002_s5 = smul.u32 (!%p155_p10), 96, %s2212_s15  ;;  %s2231_s20 = smov (!%p155_p10), 8  }
  0x14   : > { %s2232_s21 = smov (!%p155_p10), 12   ;;  %s2233_s24 = smov (!%p155_p10), 16  }
  0x15   : > { %s2234_s27 = smov (!%p155_p10), 20   ;;  %s2235_s28 = smov (!%p155_p10), 24  }
  0x16   : > { %s179_s4 = scalar_select %p178_p12, %s2216_s16, 1  ;;  %vm269_vm0 = vcmask 1042432   ;;  %vm270_vm1 = vcmask 1046532   ;;  %vm441_vm3 = vcmask 1041408   ;;  %vm442_vm4 = vcmask 1045508  }
  0x17   : > { %vm2339_vm2 = vmor %vm269_vm0, %vm270_vm1  ;;  %vm204_vm6 = vcmask 27648   ;;  %s2236_s29 = smov 28   ;;  %vm376_vm7 = vcmask 60448   ;;  %vm548_vm8 = vcmask 93248   ;;  %vm649_vm9 = vcmask 126048  }
  0x18   : > { %s2044_s6 = smul.u32 240, %s179_s4  ;;  %vm2382_vm5 = vmor %vm441_vm3, %vm442_vm4  ;;  %vm818_vm10 = vcmask 158848   ;;  %vm987_vm11 = vcmask 191648   ;;  %vm1088_vm12 = vcmask 224448   ;;  %vm1257_vm13 = vcmask 257248  }
  0x19   : > { %vm1426_vm14 = vcmask 290048   ;;  %vm1526_vm15 = vcmask 293888  }
  0x1a   : > { %s182_s9 = scalar_lea.vmem %s3136_s0, %s2044_s6  ;;  %s2237_s6 = smov 32  }
  0x1b   : > { %s2337_s10 = scalar_lea.vmem %s182_s9, %s2002_s5 }
  0x1c   : > { %v233_v1 = vld [vmem:[%s2337_s10 + $0x30] sm:$0xe]  ;;  %v234_v2 = vld [vmem:[%s2337_s10 + $0x34] sm:$0xf]  ;;  %v221_v3 = vld [vmem:[%s2337_s10] sm:$0xe] }
  0x1d   : > { %v1800_v4 = vrot.slane %v233_v1, 9  ;;  %v302_v5 = vrot.slane %v234_v2, 5  ;;  %v222_v6 = vld [vmem:[%s2337_s10 + $0x4] sm:$0xf]  ;;  %v1796_v7 = vrot.slane %v221_v3, 9 }
  0x1e   : > { %v274_v8 = vrot.slane %v222_v6, 5  ;;  %v235_v9 = vld [vmem:[%s2337_s10 + $0x38] sm:$0x1]  ;;  %v224_v10 = vld [vmem:[%s2337_s10 + $0xc] sm:$0xe] }
  0x1f   : > { %v303_v11 = vsel %vm2339_vm2, %v1800_v4, %v302_v5  ;;  %v304_v12 = vrot.slane %v302_v5, 4  ;;  %v305_v13 = vrot.slane %v235_v9, 5  ;;  %v225_v14 = vld [vmem:[%s2337_s10 + $0x10] sm:$0xf]  ;;  %v1797_v15 = vrot.slane %v224_v10, 9 }
  0x20   : > { %344 = vrot.lane.b32.xlu1 %v303_v11, %s2230_s11  ;;  %v275_v16 = vsel %vm2339_vm2, %v1796_v7, %v274_v8  ;;  %v281_v17 = vrot.slane %v225_v14, 5  ;;  %v226_v18 = vld [vmem:[%s2337_s10 + $0x14] sm:$0x1]  ;;  %v236_v19 = vld [vmem:[%s2337_s10 + $0x3c] sm:$0xe]  ;;  %v276_v35 = vrot.slane %v274_v8, 4 }
  0x21   : > { %328 = vrot.lane.b32.xlu0 %v275_v16, %s2230_s11  ;;  %v306_v20 = vsel %vm2339_vm2, %v304_v12, %v305_v13  ;;  %v284_v21 = vrot.slane %v226_v18, 5  ;;  %v237_v22 = vld [vmem:[%s2337_s10 + $0x40] sm:$0xf]  ;;  %v1801_v25 = vrot.slane %v236_v19, 9  ;;  %v238_v27 = vld [vmem:[%s2337_s10 + $0x44] sm:$0x1] }
  0x22   : > { %v282_v23 = vsel %vm2339_vm2, %v1797_v15, %v281_v17  ;;  %v283_v24 = vrot.slane %v281_v17, 4  ;;  %v309_v26 = vrot.slane %v237_v22, 5  ;;  %v223_v28 = vld [vmem:[%s2337_s10 + $0x8] sm:$0x1]  ;;  %v394_v29 = vld [vmem:[%s2337_s10 + $0x4] sm:$0xf] }
  0x23   : > { %v312_v32 = vrot.slane %v238_v27, 5  ;;  %v446_v33 = vrot.slane %v394_v29, 6  ;;  %v277_v36 = vrot.slane %v223_v28, 5  ;;  %v395_v37 = vld [vmem:[%s2337_s10 + $0x8] sm:$0x3] }
  0x24   : > { %346 = vrot.lane.b32.xlu1 %v306_v20, %s2230_s11  ;;  %v285_v30 = vsel %vm2339_vm2, %v283_v24, %v284_v21  ;;  %v311_v31 = vrot.slane %v309_v26, 4  ;;  %v310_v34 = vsel %vm2339_vm2, %v1801_v25, %v309_v26  ;;  %v406_v38 = vld [vmem:[%s2337_s10 + $0x34] sm:$0xf]  ;;  %v393_v39 = vld [vmem:[%s2337_s10] sm:$0xc]  ;;  %v449_v42 = vrot.slane %v395_v37, 6 }
  0x25   : > { %332 = vrot.lane.b32.xlu0 %v282_v23, %s2230_s11  ;;  %v448_v41 = vrot.slane %v446_v33, 4  ;;  %v474_v43 = vrot.slane %v406_v38, 6  ;;  %v278_v44 = vsel %vm2339_vm2, %v276_v35, %v277_v36  ;;  %v1804_v46 = vrot.slane %v393_v39, 10  ;;  %v407_v47 = vld [vmem:[%s2337_s10 + $0x38] sm:$0x3] }
  0x26   : > { %v313_v40 = vsel %vm2339_vm2, %v311_v31, %v312_v32  ;;  %v397_v48 = vld [vmem:[%s2337_s10 + $0x10] sm:$0xf]  ;;  %v477_v52 = vrot.slane %v407_v47, 6  ;;  %v398_v56 = vld [vmem:[%s2337_s10 + $0x14] sm:$0x3] }
  0x27   : > { %v405_v49 = vld [vmem:[%s2337_s10 + $0x30] sm:$0xc]  ;;  %v450_v50 = vsel %vm2382_vm5, %v448_v41, %v449_v42  ;;  %v476_v51 = vrot.slane %v474_v43, 4  ;;  %v453_v53 = vrot.slane %v397_v48, 6  ;;  %v447_v54 = vsel %vm2382_vm5, %v1804_v46, %v446_v33  ;;  %v409_v57 = vld [vmem:[%s2337_s10 + $0x40] sm:$0xf] }
  0x28   : > { %334 = vrot.lane.b32.xlu1 %v285_v30, %s2230_s11  ;;  %v1808_v55 = vrot.slane %v405_v49, 10  ;;  %v396_v58 = vld [vmem:[%s2337_s10 + $0xc] sm:$0xc]  ;;  %v456_v61 = vrot.slane %v398_v56, 6  ;;  %v481_v62 = vrot.slane %v409_v57, 6 }
  0x29   : > { %348 = vrot.lane.b32.xlu0 %v310_v34, %s2230_s11  ;;  %v478_v59 = vsel %vm2382_vm5, %v476_v51, %v477_v52  ;;  %v455_v60 = vrot.slane %v453_v53, 4  ;;  %v1805_v1 = vrot.slane %v396_v58, 10  ;;  %v410_v2 = vld [vmem:[%s2337_s10 + $0x44] sm:$0x3]  ;;  %v408_v3 = vld [vmem:[%s2337_s10 + $0x3c] sm:$0xc] }
  0x2a   : > { %v475_v63 = vsel %vm2382_vm5, %v1808_v55, %v474_v43  ;;  %v483_v5 = vrot.slane %v481_v62, 4  ;;  %v484_v6 = vrot.slane %v410_v2, 6  ;;  %v1809_v8 = vrot.slane %v408_v3, 10  ;;  %v1815_v11 = vld [vmem:[%s2337_s10 + $0x1c] sm:$0xf] }
  0x2b   : > { %v457_v4 = vsel %vm2382_vm5, %v455_v60, %v456_v61  ;;  %v454_v7 = vsel %vm2382_vm5, %v1805_v1, %v453_v53  ;;  %v1814_v12 = vld [vmem:[%s2337_s10 + $0x18] sm:$0xf]  ;;  %v1823_v13 = vld [vmem:[%s2337_s10 + $0x4c] sm:$0xf]  ;;  %v1822_v14 = vld [vmem:[%s2337_s10 + $0x48] sm:$0xf] }
  0x2c   : > { %350 = vrot.lane.b32.xlu1 %v313_v40, %s2230_s11  ;;  %v485_v9 = vsel %vm2382_vm5, %v483_v5, %v484_v6  ;;  %v482_v10 = vsel %vm2382_vm5, %v1809_v8, %v481_v62  ;;  %v1831_v15 = vld [vmem:[%s2337_s10 + $0x1c] sm:$0xf]  ;;  %v1817_v16 = vld [vmem:[%s2337_s10 + $0x28] sm:$0xf]  ;;  %v1832_v17 = vld [vmem:[%s2337_s10 + $0x20] sm:$0x1] }
  0x2d   : > { %330 = vrot.lane.b32.xlu0 %v278_v44, %s2230_s11  ;;  %v716_v18 = vrot.slane %v1831_v15, 5  ;;  %v1816_v19 = vld [vmem:[%s2337_s10 + $0x24] sm:$0xf]  ;;  %v1843_v20 = vld [vmem:[%s2337_s10 + $0x4c] sm:$0xf]  ;;  %v719_v24 = vrot.slane %v1832_v17, 5 }
  0x2e   : > { %v1825_v21 = vld [vmem:[%s2337_s10 + $0x58] sm:$0xf]  ;;  %v1824_v23 = vld [vmem:[%s2337_s10 + $0x54] sm:$0xf]  ;;  %v1844_v25 = vld [vmem:[%s2337_s10 + $0x50] sm:$0x1] }
  0x2f   : > { %v1830_v22 = vld [vmem:[%s2337_s10 + $0x18] sm:$0xe]  ;;  %v718_v26 = vrot.slane %v716_v18, 4  ;;  %v744_v27 = vrot.slane %v1843_v20, 5  ;;  %v196_v28 = vld [vmem:[%s2337_s10 + $0x30] sm:$0xf] }
  0x30   : > { %502 = vrot.lane.b32.xlu1 %v450_v50, %s2231_s20  ;;  %v188_v29 = vld [vmem:[%s2337_s10] sm:$0xf]  ;;  %v1854_v30 = vrot.slane %v1830_v22, 9  ;;  %v1842_v31 = vld [vmem:[%s2337_s10 + $0x48] sm:$0xe]  ;;  %v747_v34 = vrot.slane %v1844_v25, 5 }
  0x31   : > { %500 = vrot.lane.b32.xlu0 %v447_v54, %s2231_s20  ;;  %v1834_v32 = vld [vmem:[%s2337_s10 + $0x28] sm:$0xf]  ;;  %213 = vst.msk [vmem:[#allocation2 + $0x20] sm:$0xf] %vm204_vm6, %v196_v28  ;;  %205 = vst.msk [vmem:[#allocation2] sm:$0xf] %vm204_vm6, %v188_v29  ;;  %v720_v36 = vsel %vm2339_vm2, %v718_v26, %v719_v24 }
  0x32   : > { %v197_v33 = vld [vmem:[%s2337_s10 + $0x34] sm:$0xf]  ;;  %v190_v35 = vld [vmem:[%s2337_s10 + $0xc] sm:$0xf]  ;;  %v746_v37 = vrot.slane %v744_v27, 4  ;;  %v1858_v38 = vrot.slane %v1842_v31, 9  ;;  %v717_v41 = vsel %vm2339_vm2, %v1854_v30, %v716_v18 }
  0x33   : > { %214 = vst.msk [vmem:[#allocation2 + $0x24] sm:$0xf] %vm204_vm6, %v197_v33  ;;  %v1835_v39 = vld [vmem:[%s2337_s10 + $0x2c] sm:$0x1]  ;;  %v723_v40 = vrot.slane %v1834_v32, 5 }
  0x34   : > { %518 = vrot.lane.b32.xlu1 %v478_v59, %s2231_s20  ;;  %207 = vst.msk [vmem:[#allocation2 + $0x8] sm:$0xf] %vm204_vm6, %v190_v35  ;;  %v1846_v42 = vld [vmem:[%s2337_s10 + $0x58] sm:$0xf]  ;;  %v191_v43 = vld [vmem:[%s2337_s10 + $0x10] sm:$0xf]  ;;  %v748_v48 = vsel %vm2339_vm2, %v746_v37, %v747_v34  ;;  %v745_v53 = vsel %vm2339_vm2, %v1858_v38, %v744_v27 }
  0x35   : > { %516 = vrot.lane.b32.xlu0 %v475_v63, %s2231_s20  ;;  %v198_v44 = vld [vmem:[%s2337_s10 + $0x3c] sm:$0xf]  ;;  %v1833_v46 = vld [vmem:[%s2337_s10 + $0x24] sm:$0xe]  ;;  %208 = vst.msk [vmem:[#allocation2 + $0xc] sm:$0xf] %vm204_vm6, %v191_v43 }
  0x36   : > { %215 = vst.msk [vmem:[#allocation2 + $0x28] sm:$0xf] %vm204_vm6, %v198_v44  ;;  %v199_v47 = vld [vmem:[%s2337_s10 + $0x40] sm:$0xf]  ;;  %v725_v49 = vrot.slane %v723_v40, 4  ;;  %v726_v50 = vrot.slane %v1835_v39, 5 }
  0x37   : > { %v751_v51 = vrot.slane %v1846_v42, 5  ;;  %216 = vst.msk [vmem:[#allocation2 + $0x2c] sm:$0xf] %vm204_vm6, %v199_v47  ;;  %v189_v52 = vld [vmem:[%s2337_s10 + $0x4] sm:$0xf]  ;;  %v1855_v54 = vrot.slane %v1833_v46, 9 }
  0x38   : > { %506 = vrot.lane.b32.xlu1 %v457_v4, %s2231_s20  ;;  %v1847_v55 = vld [vmem:[%s2337_s10 + $0x5c] sm:$0x1]  ;;  %206 = vst.msk [vmem:[#allocation2 + $0x4] sm:$0xf] %vm204_vm6, %v189_v52  ;;  %v1845_v57 = vld [vmem:[%s2337_s10 + $0x54] sm:$0xe]  ;;  %v727_v58 = vsel %vm2339_vm2, %v725_v49, %v726_v50 }
  0x39   : > { %504 = vrot.lane.b32.xlu0 %v454_v7, %s2231_s20  ;;  %v1863_v56 = vld [vmem:[%s2337_s10 + $0x1c] sm:$0xf]  ;;  %v753_v59 = vrot.slane %v751_v51, 4  ;;  %v754_v60 = vrot.slane %v1847_v55, 5  ;;  %v724_v62 = vsel %vm2339_vm2, %v1855_v54, %v723_v40  ;;  %v1859_v63 = vrot.slane %v1845_v57, 9 }
  0x3a   : > { %v885_v61 = vrot.slane %v1863_v56, 6  ;;  %v1864_v1 = vld [vmem:[%s2337_s10 + $0x20] sm:$0x3]  ;;  %v1875_v2 = vld [vmem:[%s2337_s10 + $0x4c] sm:$0xf] }
  0x3b   : > { %v1862_v3 = vld [vmem:[%s2337_s10 + $0x18] sm:$0xc]  ;;  %v755_v4 = vsel %vm2339_vm2, %v753_v59, %v754_v60  ;;  %v888_v6 = vrot.slane %v1864_v1, 6  ;;  %v913_v7 = vrot.slane %v1875_v2, 6  ;;  %v752_v8 = vsel %vm2339_vm2, %v1859_v63, %v751_v51  ;;  %v1879_v28 = vld [vmem:[%s2337_s10 + $0x5c] sm:$0x3] }
  0x3c   : > { %522 = vrot.lane.b32.xlu1 %v485_v9, %s2231_s20  ;;  %v887_v5 = vrot.slane %v885_v61, 4  ;;  %v1886_v9 = vrot.slane %v1862_v3, 10  ;;  %v1878_v20 = vld [vmem:[%s2337_s10 + $0x58] sm:$0xf]  ;;  %v1877_v29 = vld [vmem:[%s2337_s10 + $0x54] sm:$0xc] }
  0x3d   : > { %520 = vrot.lane.b32.xlu0 %v482_v10, %s2231_s20  ;;  %v1876_v10 = vld [vmem:[%s2337_s10 + $0x50] sm:$0x3]  ;;  %v920_v25 = vrot.slane %v1878_v20, 6  ;;  %v923_v32 = vrot.slane %v1879_v28, 6  ;;  %v1891_v34 = vrot.slane %v1877_v29, 10 }
  0x3e   : > { %v916_v15 = vrot.slane %v1876_v10, 6  ;;  %v886_v17 = vsel %vm2382_vm5, %v1886_v9, %v885_v61  ;;  %v1897_v37 = vld [vmem:[%s2337_s10 + $0x34] sm:$0xf]  ;;  %v1896_v38 = vld [vmem:[%s2337_s10 + $0x30] sm:$0xf] }
  0x3f   : > { %v922_v31 = vrot.slane %v920_v25, 4  ;;  %v1905_v39 = vld [vmem:[%s2337_s10 + $0x64] sm:$0xf]  ;;  %v1904_v40 = vld [vmem:[%s2337_s10 + $0x60] sm:$0xf] }
  0x40   : > { %603 = vrot.lane.b32.xlu1 %v1815_v11, %s2232_s21  ;;  %v1866_v11 = vld [vmem:[%s2337_s10 + $0x28] sm:$0xf]  ;;  %v1899_v42 = vld [vmem:[%s2337_s10 + $0x40] sm:$0xf]  ;;  %v1898_v44 = vld [vmem:[%s2337_s10 + $0x3c] sm:$0xf] }
  0x41   : > { %601 = vrot.lane.b32.xlu0 %v1814_v12, %s2232_s21  ;;  %v1874_v12 = vld [vmem:[%s2337_s10 + $0x48] sm:$0xc]  ;;  %v924_v35 = vsel %vm2382_vm5, %v922_v31, %v923_v32  ;;  %v1914_v46 = vld [vmem:[%s2337_s10 + $0x38] sm:$0x1]  ;;  %v1925_v47 = vld [vmem:[%s2337_s10 + $0x64] sm:$0xf] }
  0x42   : > { %v1890_v18 = vrot.slane %v1874_v12, 10  ;;  %v1907_v49 = vld [vmem:[%s2337_s10 + $0x70] sm:$0xf]  ;;  %v1906_v50 = vld [vmem:[%s2337_s10 + $0x6c] sm:$0xf]  ;;  %v1158_v52 = vrot.slane %v1914_v46, 5 }
  0x43   : > { %v1926_v55 = vld [vmem:[%s2337_s10 + $0x68] sm:$0x1]  ;;  %v1916_v56 = vld [vmem:[%s2337_s10 + $0x40] sm:$0xf]  ;;  %v1917_v1 = vld [vmem:[%s2337_s10 + $0x44] sm:$0x1] }
  0x44   : > { %619 = vrot.lane.b32.xlu1 %v1823_v13, %s2232_s21  ;;  %v889_v13 = vsel %vm2382_vm5, %v887_v5, %v888_v6  ;;  %v914_v26 = vsel %vm2382_vm5, %v1890_v18, %v913_v7  ;;  %v1924_v57 = vld [vmem:[%s2337_s10 + $0x60] sm:$0xe]  ;;  %v1186_v60 = vrot.slane %v1926_v55, 5  ;;  %v1162_v61 = vrot.slane %v1916_v56, 5  ;;  %v1928_v2 = vld [vmem:[%s2337_s10 + $0x70] sm:$0xf] }
  0x45   : > { %617 = vrot.lane.b32.xlu0 %v1822_v14, %s2232_s21  ;;  %v915_v14 = vrot.slane %v913_v7, 4  ;;  %v1940_v63 = vrot.slane %v1924_v57, 9  ;;  %v1915_v3 = vld [vmem:[%s2337_s10 + $0x3c] sm:$0xe]  ;;  %v1165_v6 = vrot.slane %v1917_v1, 5 }
  0x46   : > { %v1164_v5 = vrot.slane %v1162_v61, 4  ;;  %v1929_v7 = vld [vmem:[%s2337_s10 + $0x74] sm:$0x1]  ;;  %v1937_v10 = vrot.slane %v1915_v3, 9  ;;  %v1927_v12 = vld [vmem:[%s2337_s10 + $0x6c] sm:$0xe] }
  0x47   : > { %v917_v22 = vsel %vm2382_vm5, %v915_v14, %v916_v15  ;;  %v1944_v18 = vld [vmem:[%s2337_s10 + $0x30] sm:$0xc]  ;;  %v1941_v20 = vrot.slane %v1927_v12, 9  ;;  %v1956_v28 = vld [vmem:[%s2337_s10 + $0x60] sm:$0xc] }
  0x48   : > { %607 = vrot.lane.b32.xlu1 %v1817_v16, %s2232_s21  ;;  %v892_v16 = vrot.slane %v1866_v11, 6  ;;  %v1945_v11 = vld [vmem:[%s2337_s10 + $0x34] sm:$0xf]  ;;  %v1166_v14 = vsel %vm2339_vm2, %v1164_v5, %v1165_v6  ;;  %v193_v31 = vld [vmem:[%s2337_s10 + $0x1c] sm:$0xf] }
  0x49   : > { %605 = vrot.lane.b32.xlu0 %v1816_v19, %s2232_s21  ;;  %v1867_v19 = vld [vmem:[%s2337_s10 + $0x2c] sm:$0x3]  ;;  %v192_v32 = vld [vmem:[%s2337_s10 + $0x18] sm:$0xf]  ;;  %210 = vst.msk [vmem:[#allocation2 + $0x14] sm:$0xf] %vm204_vm6, %v193_v31 }
  0x4a   : > { %v895_v24 = vrot.slane %v1867_v19, 6  ;;  %v1163_v19 = vsel %vm2339_vm2, %v1937_v10, %v1162_v61  ;;  %209 = vst.msk [vmem:[#allocation2 + $0x10] sm:$0xf] %vm204_vm6, %v192_v32  ;;  %v2614_v55 = vld [vmem:[%s2337_s10 + $0x40] sm:$0xf] }
  0x4b   : > { %v239_v57 = vld [vmem:[%s2337_s10 + $0x48] sm:$0xe]  ;;  %v1947_v1 = vld [vmem:[%s2337_s10 + $0x3c] sm:$0xc]  ;;  %v1960_v5 = vld [vmem:[%s2337_s10 + $0x70] sm:$0xf] }
  0x4c   : > { %623 = vrot.lane.b32.xlu1 %v1825_v21, %s2232_s21  ;;  %v1865_v21 = vld [vmem:[%s2337_s10 + $0x24] sm:$0xc]  ;;  %v1961_v12 = vld [vmem:[%s2337_s10 + $0x74] sm:$0x3] }
  0x4d   : > { %621 = vrot.lane.b32.xlu0 %v1824_v23, %s2232_s21  ;;  %v894_v23 = vrot.slane %v892_v16, 4  ;;  %v1887_v27 = vrot.slane %v1865_v21, 10  ;;  %v1957_v21 = vld [vmem:[%s2337_s10 + $0x64] sm:$0xf]  ;;  %v202_v31 = vld [vmem:[%s2337_s10 + $0x54] sm:$0xf] }
  0x4e   : > { %219 = vst.msk [vmem:[#allocation2 + $0x38] sm:$0xf] %vm204_vm6, %v202_v31 }
  0x4f   : > { %v896_v30 = vsel %vm2382_vm5, %v894_v23, %v895_v24  ;;  %v893_v33 = vsel %vm2382_vm5, %v1887_v27, %v892_v16  ;;  %v1946_v16 = vld [vmem:[%s2337_s10 + $0x38] sm:$0x3]  ;;  %v1968_v23 = vrot.slane %v1944_v18, 10  ;;  %v1352_v27 = vrot.slane %v1957_v21, 6  ;;  %v195_v18 = vld [vmem:[%s2337_s10 + $0x28] sm:$0xf] }
  0x50   : > { %772 = vrot.lane.b32.xlu1 %v720_v36, %s2233_s24  ;;  %v921_v36 = vsel %vm2382_vm5, %v1891_v34, %v920_v25  ;;  %212 = vst.msk [vmem:[#allocation2 + $0x1c] sm:$0xf] %vm204_vm6, %v195_v18  ;;  %v1362_v21 = vrot.slane %v1961_v12, 6  ;;  %v404_v12 = vld [vmem:[%s2337_s10 + $0x2c] sm:$0x3] }
  0x51   : > { %770 = vrot.lane.b32.xlu0 %v717_v41, %s2233_s24  ;;  %v1913_v41 = vld [vmem:[%s2337_s10 + $0x34] sm:$0xf]  ;;  %v470_v18 = vrot.slane %v404_v12, 6 }
  0x52   : > { %v1155_v43 = vrot.slane %v1913_v41, 5  ;;  %v201_v41 = vld [vmem:[%s2337_s10 + $0x4c] sm:$0xf] }
  0x53   : > { %218 = vst.msk [vmem:[#allocation2 + $0x34] sm:$0xf] %vm204_vm6, %v201_v41  ;;  %v244_v41 = vld [vmem:[%s2337_s10 + $0x5c] sm:$0x1] }
  0x54   : > { %788 = vrot.lane.b32.xlu1 %v748_v48, %s2233_s24  ;;  %v1912_v48 = vld [vmem:[%s2337_s10 + $0x30] sm:$0xe]  ;;  %v1157_v51 = vrot.slane %v1155_v43, 4 }
  0x55   : > { %786 = vrot.lane.b32.xlu0 %v745_v53, %s2233_s24  ;;  %v1183_v53 = vrot.slane %v1925_v47, 5  ;;  %v1936_v54 = vrot.slane %v1912_v48, 9 }
  0x57   : > { %v1185_v59 = vrot.slane %v1183_v53, 4  ;;  %v1184_v9 = vsel %vm2339_vm2, %v1940_v63, %v1183_v53  ;;  %v1331_v63 = vrot.slane %v2614_v55, 6 }
  0x58   : > { %776 = vrot.lane.b32.xlu1 %v727_v58, %s2233_s24  ;;  %v1159_v58 = vsel %vm2339_vm2, %v1157_v51, %v1158_v52 }
  0x59   : > { %774 = vrot.lane.b32.xlu0 %v724_v62, %s2233_s24  ;;  %v1156_v62 = vsel %vm2339_vm2, %v1936_v54, %v1155_v43  ;;  %v227_v43 = vld [vmem:[%s2337_s10 + $0x18] sm:$0xe] }
  0x5a   : > { %v1798_v54 = vrot.slane %v227_v43, 9 }
  0x5c   : > { %792 = vrot.lane.b32.xlu1 %v755_v4, %s2233_s24  ;;  %v1187_v4 = vsel %vm2339_vm2, %v1185_v59, %v1186_v60 }
  0x5d   : > { %790 = vrot.lane.b32.xlu0 %v752_v8, %s2233_s24  ;;  %v1190_v8 = vrot.slane %v1928_v2, 5 }
  0x5f   : > { %v1192_v15 = vrot.slane %v1190_v8, 4  ;;  %v1191_v29 = vsel %vm2339_vm2, %v1941_v20, %v1190_v8 }
  0x60   : > { %941 = vrot.lane.b32.xlu1 %v889_v13, %s2234_s27  ;;  %v1193_v13 = vrot.slane %v1929_v7, 5  ;;  %v2129_v7 = vld [vmem:[%s3137_s1] sm:$0xff]  }
  0x61   : > { %939 = vrot.lane.b32.xlu0 %v886_v17, %s2234_s27  ;;  %v1324_v17 = vrot.slane %v1945_v11, 6  ;;  %v1333_v11 = vrot.slane %v1331_v63, 4 }
  0x62   : > { %v1194_v24 = vsel %vm2339_vm2, %v1192_v15, %v1193_v13  ;;  %v1359_v13 = vrot.slane %v1960_v5, 6 }
  0x63   : > { %v1326_v25 = vrot.slane %v1324_v17, 4 }
  0x64   : > { %957 = vrot.lane.b32.xlu1 %v917_v22, %s2234_s27  ;;  %v1327_v22 = vrot.slane %v1946_v16, 6 }
  0x65   : > { %955 = vrot.lane.b32.xlu0 %v914_v26, %s2234_s27  ;;  %v1958_v26 = vld [vmem:[%s2337_s10 + $0x68] sm:$0x3] }
  0x66   : > { %v1328_v34 = vsel %vm2382_vm5, %v1326_v25, %v1327_v22  ;;  %v232_v25 = vld [vmem:[%s2337_s10 + $0x2c] sm:$0x1] }
  0x68   : > { %945 = vrot.lane.b32.xlu1 %v896_v30, %s2234_s27  ;;  %v228_v30 = vld [vmem:[%s2337_s10 + $0x1c] sm:$0xf] }
  0x69   : > { %943 = vrot.lane.b32.xlu0 %v893_v33, %s2234_s27  ;;  %v1355_v33 = vrot.slane %v1958_v26, 6 }
  0x6c   : > { %961 = vrot.lane.b32.xlu1 %v924_v35, %s2234_s27  ;;  %v1354_v35 = vrot.slane %v1352_v27, 4 }
  0x6d   : > { %959 = vrot.lane.b32.xlu0 %v921_v36, %s2234_s27  ;;  %v1972_v36 = vrot.slane %v1956_v28, 10 }
  0x6e   : > { %v1356_v47 = vsel %vm2382_vm5, %v1354_v35, %v1355_v33  ;;  %v230_v33 = vld [vmem:[%s2337_s10 + $0x24] sm:$0xe] }
  0x6f   : > { %v1353_v53 = vsel %vm2382_vm5, %v1972_v36, %v1352_v27  ;;  %v298_v36 = vrot.slane %v232_v25, 5  ;;  %v414_v25 = vld [vmem:[%s2337_s10 + $0x54] sm:$0xc] }
  0x70   : > { %1042 = vrot.lane.b32.xlu1 %v1897_v37, %s2235_s28  ;;  %v229_v37 = vld [vmem:[%s2337_s10 + $0x20] sm:$0x1]  ;;  %v1811_v31 = vrot.slane %v414_v25, 10 }
  0x71   : > { %1040 = vrot.lane.b32.xlu0 %v1896_v38, %s2235_s28  ;;  %v288_v38 = vrot.slane %v228_v30, 5  ;;  %v291_v46 = vrot.slane %v229_v37, 5  ;;  %v203_v30 = vld [vmem:[%s2337_s10 + $0x58] sm:$0xf] }
  0x72   : > { %220 = vst.msk [vmem:[#allocation2 + $0x3c] sm:$0xf] %vm204_vm6, %v203_v30 }
  0x73   : > { %v290_v48 = vrot.slane %v288_v38, 4  ;;  %v289_v3 = vsel %vm2339_vm2, %v1798_v54, %v288_v38  ;;  %v412_v54 = vld [vmem:[%s2337_s10 + $0x4c] sm:$0xf] }
  0x74   : > { %1058 = vrot.lane.b32.xlu1 %v1905_v39, %s2235_s28  ;;  %v1325_v39 = vsel %vm2382_vm5, %v1968_v23, %v1324_v17  ;;  %v231_v17 = vld [vmem:[%s2337_s10 + $0x28] sm:$0xf]  ;;  %v1361_v23 = vrot.slane %v1359_v13, 4 }
  0x75   : > { %1056 = vrot.lane.b32.xlu0 %v1904_v40, %s2235_s28  ;;  %v2593_v40 = vld [vmem:[%s2337_s10 + $0x4c] sm:$0xf]  ;;  %v292_v60 = vsel %vm2339_vm2, %v290_v48, %v291_v46  ;;  %v295_v26 = vrot.slane %v231_v17, 5  ;;  %v326_v48 = vrot.slane %v244_v41, 5  ;;  %v1827_v41 = vld [vmem:[%s2337_s10 + $0x64] sm:$0xf] }
  0x77   : > { %v297_v35 = vrot.slane %v295_v26, 4 }
  0x78   : > { %1046 = vrot.lane.b32.xlu1 %v1899_v42, %s2235_s28  ;;  %v200_v42 = vld [vmem:[%s2337_s10 + $0x48] sm:$0xf] }
  0x79   : > { %1044 = vrot.lane.b32.xlu0 %v1898_v44, %s2235_s28  ;;  %217 = vst.msk [vmem:[#allocation2 + $0x30] sm:$0xf] %vm204_vm6, %v200_v42  ;;  %v2126_v44 = vld [vmem:[%s3137_s1 + $0x10] ss:$0 sps:$4 sm:$0x33]   ;;  %v299_v46 = vsel %vm2339_vm2, %v297_v35, %v298_v36 }
  0x7a   : > { %2042 = vmatprep.subr.msk.bf16.mxu0 %vm441_vm3, %v2126_v44  ;;  %v1553_v51 = vsel %vm441_vm3, %v2126_v44, 0  ;;  %2043 = vmatprep.subr.msk.bf16.mxu1 %vm441_vm3, %v2126_v44  ;;  %v400_v42 = vld [vmem:[%s2337_s10 + $0x1c] sm:$0xf]  ;;  %v242_v44 = vld [vmem:[%s2337_s10 + $0x54] sm:$0xe] }
  0x7b   : > { %2015 = vmatpush3.bf16.msra.mxu0 %v1553_v51  ;;  %2039 = vmatpush3.bf16.msra.mxu1 %v1553_v51 }
  0x7c   : > { %1062 = vrot.lane.b32.xlu1 %v1907_v49, %s2235_s28  ;;  %v241_v49 = vld [vmem:[%s2337_s10 + $0x50] sm:$0x1] }
  0x7d   : > { %1060 = vrot.lane.b32.xlu0 %v1906_v50, %s2235_s28  ;;  %v316_v50 = vrot.slane %v2593_v40, 5  ;;  %v319_v59 = vrot.slane %v241_v49, 5  ;;  %v1799_v40 = vrot.slane %v230_v33, 9  ;;  %v460_v49 = vrot.slane %v400_v42, 6 }
  0x7f   : > { %v318_v61 = vrot.slane %v316_v50, 4  ;;  %v296_v51 = vsel %vm2339_vm2, %v1799_v40, %v295_v26 }
  0x80   : > { %1211 = vrot.lane.b32.xlu1 %v1159_v58, %s2236_s29  ;;  %v2128_v58 = vld [vmem:[%s3137_s1 + $0x8] sm:$0xff]  }
  0x81   : > { %1209 = vrot.lane.b32.xlu0 %v1156_v62, %s2236_s29  ;;  %v1949_v62 = vld [vmem:[%s2337_s10 + $0x44] sm:$0x3]  ;;  %2016 = vmatprep.subr.bf16.mxu0 %v2128_v58  ;;  %v320_v10 = vsel %vm2339_vm2, %v318_v61, %v319_v59 }
  0x82   : > { %2017 = vmatpush3.bf16.msra.mxu0 %v2128_v58  ;;  %2037 = vmatprep.subr.bf16.mxu1 %v2128_v58  ;;  %v1334_v8 = vrot.slane %v1949_v62, 6 }
  0x83   : > { %2040 = vmatpush3.bf16.msra.mxu1 %v2128_v58  ;;  %2018 = vmatprep.subr.bf16.mxu0 %v2129_v7  ;;  %v462_v58 = vrot.slane %v460_v49, 4 }
  0x84   : > { %1227 = vrot.lane.b32.xlu1 %v1187_v4, %s2236_s29  ;;  %v1802_v4 = vrot.slane %v239_v57, 9  ;;  %2038 = vmatprep.subr.bf16.mxu1 %v2129_v7  ;;  %v1335_v22 = vsel %vm2382_vm5, %v1333_v11, %v1334_v8 }
  0x85   : > { %1225 = vrot.lane.b32.xlu0 %v1184_v9, %s2236_s29  ;;  %v1969_v9 = vrot.slane %v1947_v1, 10  ;;  %v413_v1 = vld [vmem:[%s2337_s10 + $0x50] sm:$0x3] }
  0x86   : > { %v317_v16 = vsel %vm2339_vm2, %v1802_v4, %v316_v50  ;;  %2019 = vmatpush3.bf16.msra.mxu0 %v2129_v7  ;;  %v411_v4 = vld [vmem:[%s2337_s10 + $0x48] sm:$0xc] }
  0x87   : > { %2041 = vmatpush3.bf16.msra.mxu1 %v2129_v7  ;;  %v1332_v28 = vsel %vm2382_vm5, %v1969_v9, %v1331_v63  ;;  %v491_v7 = vrot.slane %v413_v1, 6  ;;  %v1810_v11 = vrot.slane %v411_v4, 10 }
  0x88   : > { %1215 = vrot.lane.b32.xlu1 %v1166_v14, %s2236_s29  ;;  %v1959_v14 = vld [vmem:[%s2337_s10 + $0x6c] sm:$0xc] }
  0x89   : > { %1213 = vrot.lane.b32.xlu0 %v1163_v19, %s2236_s29  ;;  %v194_v19 = vld [vmem:[%s2337_s10 + $0x24] sm:$0xf] }
  0x8a   : > { %211 = vst.msk [vmem:[#allocation2 + $0x18] sm:$0xf] %vm204_vm6, %v194_v19 }
  0x8c   : > { %1231 = vrot.lane.b32.xlu1 %v1194_v24, %s2236_s29  ;;  %v1973_v24 = vrot.slane %v1959_v14, 10 }
  0x8d   : > { %1229 = vrot.lane.b32.xlu0 %v1191_v29, %s2236_s29  ;;  %v243_v29 = vld [vmem:[%s2337_s10 + $0x58] sm:$0xf] }
  0x8e   : > { %v323_v37 = vrot.slane %v243_v29, 5 }
  0x90   : > { %1380 = vrot.lane.b32.xlu1 %v1328_v34, %s2237_s6  ;;  %v1363_v34 = vsel %vm2382_vm5, %v1361_v23, %v1362_v21  ;;  %v416_v23 = vld [vmem:[%s2337_s10 + $0x5c] sm:$0x3] }
  0x91   : > { %1378 = vrot.lane.b32.xlu0 %v1325_v39, %s2237_s6  ;;  %v1360_v39 = vsel %vm2382_vm5, %v1973_v24, %v1359_v13  ;;  %v415_v13 = vld [vmem:[%s2337_s10 + $0x58] sm:$0xf] }
  0x92   : > { %v345_v52 = vpop.permute.xlu1 %344  ;;  %v495_v19 = vrot.slane %v415_v13, 6  ;;  %v1839_v13 = vld [vmem:[%s2337_s10 + $0x3c] sm:$0xe] }
  0x93   : > { %385 = vst.msk [vmem:[#allocation2 + $0x20] sm:$0xf] %vm376_vm7, %v345_v52  ;;  %v329_v56 = vpop.permute.xlu0 %328  ;;  %v1803_v52 = vrot.slane %v242_v44, 9  ;;  %v1837_v44 = vld [vmem:[%s2337_s10 + $0x34] sm:$0xf] }
  0x94   : > { %377 = vst.msk [vmem:[#allocation2] sm:$0xf] %vm376_vm7, %v329_v56  ;;  %1396 = vrot.lane.b32.xlu1 %v1356_v47, %s2237_s6  ;;  %v325_v47 = vrot.slane %v323_v37, 4  ;;  %v399_v56 = vld [vmem:[%s2337_s10 + $0x18] sm:$0xc]  ;;  %v496_v35 = vsel %vm2382_vm5, %v1811_v31, %v495_v19 }
  0x95   : > { %1394 = vrot.lane.b32.xlu0 %v1353_v53, %s2237_s6  ;;  %v401_v53 = vld [vmem:[%s2337_s10 + $0x20] sm:$0x3]  ;;  %v324_v62 = vsel %vm2339_vm2, %v1803_v52, %v323_v37  ;;  %v1806_v63 = vrot.slane %v399_v56, 10  ;;  %v1819_v37 = vld [vmem:[%s2337_s10 + $0x34] sm:$0xf] }
  0x96   : > { %v347_v2 = vpop.permute.xlu1 %346  ;;  %v327_v57 = vsel %vm2339_vm2, %v325_v47, %v326_v48  ;;  %v463_v59 = vrot.slane %v401_v53, 6  ;;  %v1821_v47 = vld [vmem:[%s2337_s10 + $0x40] sm:$0xf]  ;;  %v730_v48 = vrot.slane %v1837_v44, 5  ;;  %v1849_v52 = vld [vmem:[%s2337_s10 + $0x64] sm:$0xf] }
  0x97   : > { %386 = vst.msk [vmem:[#allocation2 + $0x24] sm:$0xf] %vm376_vm7, %v347_v2  ;;  %v333_v6 = vpop.permute.xlu0 %332  ;;  %v403_v2 = vld [vmem:[%s2337_s10 + $0x28] sm:$0xf]  ;;  %v1828_v56 = vld [vmem:[%s2337_s10 + $0x6c] sm:$0xf] }
  0x98   : > { %379 = vst.msk [vmem:[#allocation2 + $0x8] sm:$0xf] %vm376_vm7, %v333_v6  ;;  %338 = vrot.lane.b32.xlu1 %v292_v60, %s2230_s11  ;;  %v488_v60 = vrot.slane %v412_v54, 6  ;;  %v464_v5 = vsel %vm2382_vm5, %v462_v58, %v463_v59  ;;  %v467_v8 = vrot.slane %v403_v2, 6  ;;  %v1836_v54 = vld [vmem:[%s2337_s10 + $0x30] sm:$0xe] }
  0x99   : > { %336 = vrot.lane.b32.xlu0 %v289_v3, %s2230_s11  ;;  %v758_v59 = vrot.slane %v1849_v52, 5  ;;  %v1848_v2 = vld [vmem:[%s2337_s10 + $0x60] sm:$0xe] }
  0x9a   : > { %v335_v15 = vpop.permute.xlu1 %334  ;;  %v490_v6 = vrot.slane %v488_v60, 4  ;;  %v469_v17 = vrot.slane %v467_v8, 4  ;;  %v489_v21 = vsel %vm2382_vm5, %v1810_v11, %v488_v60  ;;  %v1852_v11 = vld [vmem:[%s2337_s10 + $0x70] sm:$0xf]  ;;  %v1872_v44 = vld [vmem:[%s2337_s10 + $0x40] sm:$0xf] }
  0x9b   : > { %380 = vst.msk [vmem:[#allocation2 + $0xc] sm:$0xf] %vm376_vm7, %v335_v15  ;;  %v349_v20 = vpop.permute.xlu0 %348  ;;  %v402_v15 = vld [vmem:[%s2337_s10 + $0x24] sm:$0xc]  ;;  %v760_v4 = vrot.slane %v758_v59, 4 }
  0x9c   : > { %387 = vst.msk [vmem:[#allocation2 + $0x28] sm:$0xf] %vm376_vm7, %v349_v20  ;;  %354 = vrot.lane.b32.xlu1 %v320_v10, %s2230_s11  ;;  %v461_v10 = vsel %vm2382_vm5, %v1806_v63, %v460_v49  ;;  %v471_v26 = vsel %vm2382_vm5, %v469_v17, %v470_v18  ;;  %v1840_v63 = vld [vmem:[%s2337_s10 + $0x40] sm:$0xf]  ;;  %v765_v17 = vrot.slane %v1852_v11, 5 }
  0x9d   : > { %352 = vrot.lane.b32.xlu0 %v317_v16, %s2230_s11  ;;  %v492_v16 = vsel %vm2382_vm5, %v490_v6, %v491_v7  ;;  %v737_v6 = vrot.slane %v1840_v63, 5 }
  0x9e   : > { %v351_v27 = vpop.permute.xlu1 %350 }
  0x9f   : > { %388 = vst.msk [vmem:[#allocation2 + $0x2c] sm:$0xf] %vm376_vm7, %v351_v27  ;;  %v331_v32 = vpop.permute.xlu0 %330  ;;  %v497_v27 = vrot.slane %v495_v19, 4 }
  0xa0   : > { %378 = vst.msk [vmem:[#allocation2 + $0x4] sm:$0xf] %vm376_vm7, %v331_v32  ;;  %1384 = vrot.lane.b32.xlu1 %v1335_v22, %s2237_s6  ;;  %v1807_v22 = vrot.slane %v402_v15, 10  ;;  %v739_v15 = vrot.slane %v737_v6, 4 }
  0xa1   : > { %1382 = vrot.lane.b32.xlu0 %v1332_v28, %s2237_s6  ;;  %v498_v28 = vrot.slane %v416_v23, 6 }
  0xa2   : > { %v503_v38 = vpop.permute.xlu1 %502  ;;  %v468_v30 = vsel %vm2382_vm5, %v1807_v22, %v467_v8  ;;  %v1869_v22 = vld [vmem:[%s2337_s10 + $0x34] sm:$0xf] }
  0xa3   : > { %550 = vst.msk [vmem:[#allocation2 + $0x4] sm:$0xf] %vm548_vm8, %v503_v38  ;;  %v501_v43 = vpop.permute.xlu0 %500  ;;  %v499_v33 = vsel %vm2382_vm5, %v497_v27, %v498_v28  ;;  %v899_v28 = vrot.slane %v1869_v22, 6 }
  0xa4   : > { %549 = vst.msk [vmem:[#allocation2] sm:$0xf] %vm548_vm8, %v501_v43  ;;  %1400 = vrot.lane.b32.xlu1 %v1363_v34, %s2237_s6  ;;  %v1826_v43 = vld [vmem:[%s2337_s10 + $0x60] sm:$0xf] }
  0xa5   : > { %1398 = vrot.lane.b32.xlu0 %v1360_v39, %s2237_s6  ;;  %v1818_v39 = vld [vmem:[%s2337_s10 + $0x30] sm:$0xf] }
  0xa6   : > { %v519_v50 = vpop.permute.xlu1 %518 }
  0xa7   : > { %558 = vst.msk [vmem:[#allocation2 + $0x24] sm:$0xf] %vm548_vm8, %v519_v50  ;;  %v517_v55 = vpop.permute.xlu0 %516  ;;  %v1820_v50 = vld [vmem:[%s2337_s10 + $0x3c] sm:$0xf] }
  0xa8   : > { %557 = vst.msk [vmem:[#allocation2 + $0x20] sm:$0xf] %vm548_vm8, %v517_v55  ;;  %342 = vrot.lane.b32.xlu1 %v299_v46, %s2230_s11  ;;  %v1829_v55 = vld [vmem:[%s2337_s10 + $0x70] sm:$0xf] }
  0xa9   : > { %340 = vrot.lane.b32.xlu0 %v296_v51, %s2230_s11  ;;  %v1838_v51 = vld [vmem:[%s2337_s10 + $0x38] sm:$0x1] }
  0xaa   : > { %v507_v61 = vpop.permute.xlu1 %506  ;;  %v733_v58 = vrot.slane %v1838_v51, 5  ;;  %v906_v51 = vrot.slane %v1872_v44, 6  ;;  %v1930_v44 = vld [vmem:[%s2337_s10 + $0x78] sm:$0xe] }
  0xab   : > { %552 = vst.msk [vmem:[#allocation2 + $0xc] sm:$0xf] %vm548_vm8, %v507_v61  ;;  %v505_v3 = vpop.permute.xlu0 %504  ;;  %v1856_v61 = vrot.slane %v1836_v54, 9 }
  0xac   : > { %551 = vst.msk [vmem:[#allocation2 + $0x8] sm:$0xf] %vm548_vm8, %v505_v3  ;;  %358 = vrot.lane.b32.xlu1 %v327_v57, %s2230_s11  ;;  %v732_v57 = vrot.slane %v730_v48, 4 }
  0xad   : > { %356 = vrot.lane.b32.xlu0 %v324_v62, %s2230_s11  ;;  %v1850_v62 = vld [vmem:[%s2337_s10 + $0x68] sm:$0x1]  ;;  %v731_v8 = vsel %vm2339_vm2, %v1856_v61, %v730_v48  ;;  %s2238_s11 = smov [#allocation3]  }
  0xae   : > { %v523_v9 = vpop.permute.xlu1 %522  ;;  %v734_v3 = vsel %vm2339_vm2, %v732_v57, %v733_v58  ;;  %v1871_v58 = vld [vmem:[%s2337_s10 + $0x3c] sm:$0xc] }
  0xaf   : > { %560 = vst.msk [vmem:[#allocation2 + $0x2c] sm:$0xf] %vm548_vm8, %v523_v9  ;;  %v521_v14 = vpop.permute.xlu0 %520  ;;  %v1860_v9 = vrot.slane %v1848_v2, 9  ;;  %v1889_v2 = vrot.slane %v1871_v58, 10 }
  0xb0   : > { %559 = vst.msk [vmem:[#allocation2 + $0x28] sm:$0xf] %vm548_vm8, %v521_v14  ;;  %510 = vrot.lane.b32.xlu1 %v464_v5, %s2231_s20  ;;  %v761_v5 = vrot.slane %v1850_v62, 5 }
  0xb1   : > { %508 = vrot.lane.b32.xlu0 %v461_v10, %s2231_s20  ;;  %v1841_v10 = vld [vmem:[%s2337_s10 + $0x44] sm:$0x1]  ;;  %v759_v19 = vsel %vm2339_vm2, %v1860_v9, %v758_v59 }
  0xb2   : > { %v604_v20 = vpop.permute.xlu1 %603  ;;  %v762_v14 = vsel %vm2339_vm2, %v760_v4, %v761_v5  ;;  %v1883_v5 = vld [vmem:[%s2337_s10 + $0x6c] sm:$0xc] }
  0xb3   : > { %651 = vst.msk [vmem:[#allocation2 + $0x4] sm:$0xf] %vm649_vm9, %v604_v20  ;;  %v602_v24 = vpop.permute.xlu0 %601  ;;  %v1857_v20 = vrot.slane %v1839_v13, 9  ;;  %v1893_v11 = vrot.slane %v1883_v5, 10 }
  0xb4   : > { %650 = vst.msk [vmem:[#allocation2] sm:$0xf] %vm649_vm9, %v602_v24  ;;  %526 = vrot.lane.b32.xlu1 %v492_v16, %s2231_s20  ;;  %v740_v16 = vrot.slane %v1841_v10, 5  ;;  %v1851_v24 = vld [vmem:[%s2337_s10 + $0x6c] sm:$0xe]  ;;  %v907_v10 = vsel %vm2382_vm5, %v1889_v2, %v906_v51 }
  0xb5   : > { %524 = vrot.lane.b32.xlu0 %v489_v21, %s2231_s20  ;;  %v1853_v21 = vld [vmem:[%s2337_s10 + $0x74] sm:$0x1]  ;;  %v1861_v31 = vrot.slane %v1851_v24, 9  ;;  %v1919_v24 = vld [vmem:[%s2337_s10 + $0x4c] sm:$0xf] }
  0xb6   : > { %v620_v29 = vpop.permute.xlu1 %619  ;;  %v741_v25 = vsel %vm2339_vm2, %v739_v15, %v740_v16  ;;  %v768_v27 = vrot.slane %v1853_v21, 5  ;;  %v1909_v21 = vld [vmem:[%s2337_s10 + $0x7c] sm:$0xf]  ;;  %v1935_v2 = vld [vmem:[%s2337_s10 + $0x8c] sm:$0x1] }
  0xb7   : > { %659 = vst.msk [vmem:[#allocation2 + $0x24] sm:$0xf] %vm649_vm9, %v620_v29  ;;  %v618_v32 = vpop.permute.xlu0 %617 }
  0xb8   : > { %658 = vst.msk [vmem:[#allocation2 + $0x20] sm:$0xf] %vm649_vm9, %v618_v32  ;;  %514 = vrot.lane.b32.xlu1 %v471_v26, %s2231_s20  ;;  %v767_v26 = vrot.slane %v765_v17, 4  ;;  %v1870_v32 = vld [vmem:[%s2337_s10 + $0x38] sm:$0x3] }
  0xb9   : > { %512 = vrot.lane.b32.xlu0 %v468_v30, %s2231_s20  ;;  %v738_v30 = vsel %vm2339_vm2, %v1857_v20, %v737_v6 }
  0xba   : > { %v608_v34 = vpop.permute.xlu1 %607 }
  0xbb   : > { %653 = vst.msk [vmem:[#allocation2 + $0xc] sm:$0xf] %vm649_vm9, %v608_v34  ;;  %v606_v36 = vpop.permute.xlu0 %605 }
  0xbc   : > { %652 = vst.msk [vmem:[#allocation2 + $0x8] sm:$0xf] %vm649_vm9, %v606_v36  ;;  %530 = vrot.lane.b32.xlu1 %v499_v33, %s2231_s20  ;;  %v1881_v33 = vld [vmem:[%s2337_s10 + $0x64] sm:$0xf]  ;;  %v769_v36 = vsel %vm2339_vm2, %v767_v26, %v768_v27  ;;  %v1903_v26 = vld [vmem:[%s2337_s10 + $0x58] sm:$0xf] }
  0xbd   : > { %528 = vrot.lane.b32.xlu0 %v496_v35, %s2231_s20  ;;  %v1868_v35 = vld [vmem:[%s2337_s10 + $0x30] sm:$0xc]  ;;  %v1169_v27 = vrot.slane %v1919_v24, 5  ;;  %v1962_v24 = vld [vmem:[%s2337_s10 + $0x78] sm:$0xc] }
  0xbe   : > { %v624_v38 = vpop.permute.xlu1 %623 }
  0xbf   : > { %661 = vst.msk [vmem:[#allocation2 + $0x2c] sm:$0xf] %vm649_vm9, %v624_v38  ;;  %v622_v40 = vpop.permute.xlu0 %621  ;;  %v902_v38 = vrot.slane %v1870_v32, 6 }
  0xc0   : > { %660 = vst.msk [vmem:[#allocation2 + $0x28] sm:$0xf] %vm649_vm9, %v622_v40  ;;  %611 = vrot.lane.b32.xlu1 %v1819_v37, %s2232_s21  ;;  %v901_v37 = vrot.slane %v899_v28, 4 }
  0xc1   : > { %609 = vrot.lane.b32.xlu0 %v1818_v39, %s2232_s21  ;;  %v927_v39 = vrot.slane %v1881_v33, 6  ;;  %v1918_v33 = vld [vmem:[%s2337_s10 + $0x48] sm:$0xe] }
  0xc2   : > { %v773_v42 = vpop.permute.xlu1 %772  ;;  %v903_v48 = vsel %vm2382_vm5, %v901_v37, %v902_v38 }
  0xc3   : > { %820 = vst.msk [vmem:[#allocation2 + $0x4] sm:$0xf] %vm818_vm10, %v773_v42  ;;  %v771_v46 = vpop.permute.xlu0 %770  ;;  %v1888_v42 = vrot.slane %v1868_v35, 10  ;;  %v1910_v35 = vld [vmem:[%s2337_s10 + $0x84] sm:$0xf] }
  0xc4   : > { %819 = vst.msk [vmem:[#allocation2] sm:$0xf] %vm818_vm10, %v771_v46  ;;  %627 = vrot.lane.b32.xlu1 %v1827_v41, %s2232_s21  ;;  %v766_v41 = vsel %vm2339_vm2, %v1861_v31, %v765_v17  ;;  %v1901_v17 = vld [vmem:[%s2337_s10 + $0x4c] sm:$0xf]  ;;  %v1931_v31 = vld [vmem:[%s2337_s10 + $0x7c] sm:$0xf] }
  0xc5   : > { %625 = vrot.lane.b32.xlu0 %v1826_v43, %s2232_s21  ;;  %v1882_v43 = vld [vmem:[%s2337_s10 + $0x68] sm:$0x3]  ;;  %v1197_v38 = vrot.slane %v1931_v31, 5 }
  0xc6   : > { %v789_v49 = vpop.permute.xlu1 %788 }
  0xc7   : > { %828 = vst.msk [vmem:[#allocation2 + $0x24] sm:$0xf] %vm818_vm10, %v789_v49  ;;  %v787_v53 = vpop.permute.xlu0 %786  ;;  %v929_v49 = vrot.slane %v927_v39, 4 }
  0xc8   : > { %827 = vst.msk [vmem:[#allocation2 + $0x20] sm:$0xf] %vm818_vm10, %v787_v53  ;;  %615 = vrot.lane.b32.xlu1 %v1821_v47, %s2232_s21  ;;  %v1880_v47 = vld [vmem:[%s2337_s10 + $0x60] sm:$0xc]  ;;  %v900_v53 = vsel %vm2382_vm5, %v1888_v42, %v899_v28  ;;  %v1922_v42 = vld [vmem:[%s2337_s10 + $0x58] sm:$0xf] }
  0xc9   : > { %613 = vrot.lane.b32.xlu0 %v1820_v50, %s2232_s21  ;;  %v930_v50 = vrot.slane %v1882_v43, 6  ;;  %v1892_v54 = vrot.slane %v1880_v47, 10  ;;  %v1199_v47 = vrot.slane %v1197_v38, 4 }
  0xca   : > { %v777_v60 = vpop.permute.xlu1 %776 }
  0xcb   : > { %822 = vst.msk [vmem:[#allocation2 + $0xc] sm:$0xf] %vm818_vm10, %v777_v60  ;;  %v775_v1 = vpop.permute.xlu0 %774  ;;  %v931_v59 = vsel %vm2382_vm5, %v929_v49, %v930_v50  ;;  %v908_v60 = vrot.slane %v906_v51, 4  ;;  %v1176_v49 = vrot.slane %v1922_v42, 5 }
  0xcc   : > { %821 = vst.msk [vmem:[#allocation2 + $0x8] sm:$0xf] %vm818_vm10, %v775_v1  ;;  %631 = vrot.lane.b32.xlu1 %v1829_v55, %s2232_s21  ;;  %v1873_v55 = vld [vmem:[%s2337_s10 + $0x44] sm:$0x3]  ;;  %v928_v1 = vsel %vm2382_vm5, %v1892_v54, %v927_v39  ;;  %v1934_v54 = vld [vmem:[%s2337_s10 + $0x88] sm:$0xf] }
  0xcd   : > { %629 = vrot.lane.b32.xlu0 %v1828_v56, %s2232_s21  ;;  %v1884_v56 = vld [vmem:[%s2337_s10 + $0x70] sm:$0xf]  ;;  %v909_v61 = vrot.slane %v1873_v55, 6  ;;  %v1178_v58 = vrot.slane %v1176_v49, 4  ;;  %s2140_s21 = sshll.u32 %s2238_s11, 4  ;;  %s2141_s21 = int_to_ptr.vmem [resolvable:$false] %s2140_s21 }
  0xce   : > { %v793_v7 = vpop.permute.xlu1 %792  ;;  %v934_v62 = vrot.slane %v1884_v56, 6  ;;  %v1921_v56 = vld [vmem:[%s2337_s10 + $0x54] sm:$0xe] }
  0xcf   : > { %830 = vst.msk [vmem:[#allocation2 + $0x2c] sm:$0xf] %vm818_vm10, %v793_v7  ;;  %v791_v12 = vpop.permute.xlu0 %790  ;;  %v910_v6 = vsel %vm2382_vm5, %v908_v60, %v909_v61  ;;  %v1204_v60 = vrot.slane %v1934_v54, 5  ;;  %v1951_v61 = vld [vmem:[%s2337_s10 + $0x4c] sm:$0xf] }
  0xd0   : > { %829 = vst.msk [vmem:[#allocation2 + $0x28] sm:$0xf] %vm818_vm10, %v791_v12  ;;  %780 = vrot.lane.b32.xlu1 %v734_v3, %s2233_s24  ;;  %v1885_v3 = vld [vmem:[%s2337_s10 + $0x74] sm:$0x3]  ;;  %v936_v7 = vrot.slane %v934_v62, 4  ;;  %v935_v15 = vsel %vm2382_vm5, %v1893_v11, %v934_v62  ;;  %v1338_v5 = vrot.slane %v1951_v61, 6 }
  0xd1   : > { %778 = vrot.lane.b32.xlu0 %v731_v8, %s2233_s24  ;;  %v937_v8 = vrot.slane %v1885_v3, 6 }
  0xd2   : > { %v942_v18 = vpop.permute.xlu1 %941 }
  0xd3   : > { %989 = vst.msk [vmem:[#allocation2 + $0x4] sm:$0xf] %vm987_vm11, %v942_v18  ;;  %v940_v23 = vpop.permute.xlu0 %939  ;;  %v938_v13 = vsel %vm2382_vm5, %v936_v7, %v937_v8  ;;  %v1206_v7 = vrot.slane %v1204_v60, 4  ;;  %v1207_v8 = vrot.slane %v1935_v2, 5 }
  0xd4   : > { %988 = vst.msk [vmem:[#allocation2] sm:$0xf] %vm987_vm11, %v940_v23  ;;  %796 = vrot.lane.b32.xlu1 %v762_v14, %s2233_s24  ;;  %v1908_v23 = vld [vmem:[%s2337_s10 + $0x78] sm:$0xf] }
  0xd5   : > { %794 = vrot.lane.b32.xlu0 %v759_v19, %s2233_s24  ;;  %v1900_v19 = vld [vmem:[%s2337_s10 + $0x48] sm:$0xf] }
  0xd6   : > { %v958_v29 = vpop.permute.xlu1 %957 }
  0xd7   : > { %997 = vst.msk [vmem:[#allocation2 + $0x24] sm:$0xf] %vm987_vm11, %v958_v29  ;;  %v956_v34 = vpop.permute.xlu0 %955  ;;  %v1902_v29 = vld [vmem:[%s2337_s10 + $0x54] sm:$0xf] }
  0xd8   : > { %996 = vst.msk [vmem:[#allocation2 + $0x20] sm:$0xf] %vm987_vm11, %v956_v34  ;;  %784 = vrot.lane.b32.xlu1 %v741_v25, %s2233_s24  ;;  %v1911_v34 = vld [vmem:[%s2337_s10 + $0x88] sm:$0xf] }
  0xd9   : > { %782 = vrot.lane.b32.xlu0 %v738_v30, %s2233_s24  ;;  %v1920_v30 = vld [vmem:[%s2337_s10 + $0x50] sm:$0x1] }
  0xda   : > { %v946_v40 = vpop.permute.xlu1 %945  ;;  %v1172_v37 = vrot.slane %v1920_v30, 5  ;;  %v1974_v30 = vrot.slane %v1962_v24, 10 }
  0xdb   : > { %991 = vst.msk [vmem:[#allocation2 + $0xc] sm:$0xf] %vm987_vm11, %v946_v40  ;;  %v944_v46 = vpop.permute.xlu0 %943  ;;  %v1938_v40 = vrot.slane %v1918_v33, 9 }
  0xdc   : > { %990 = vst.msk [vmem:[#allocation2 + $0x8] sm:$0xf] %vm987_vm11, %v944_v46  ;;  %800 = vrot.lane.b32.xlu1 %v769_v36, %s2233_s24  ;;  %v1171_v36 = vrot.slane %v1169_v27, 4 }
  0xdd   : > { %798 = vrot.lane.b32.xlu0 %v766_v41, %s2233_s24  ;;  %v1932_v41 = vld [vmem:[%s2337_s10 + $0x80] sm:$0x1]  ;;  %v1170_v51 = vsel %vm2339_vm2, %v1938_v40, %v1169_v27 }
  0xde   : > { %v962_v52 = vpop.permute.xlu1 %961  ;;  %v1173_v46 = vsel %vm2339_vm2, %v1171_v36, %v1172_v37 }
  0xdf   : > { %999 = vst.msk [vmem:[#allocation2 + $0x2c] sm:$0xf] %vm987_vm11, %v962_v52  ;;  %v960_v57 = vpop.permute.xlu0 %959  ;;  %v1942_v52 = vrot.slane %v1930_v44, 9 }
  0xe0   : > { %998 = vst.msk [vmem:[#allocation2 + $0x28] sm:$0xf] %vm987_vm11, %v960_v57  ;;  %949 = vrot.lane.b32.xlu1 %v903_v48, %s2234_s27  ;;  %v1200_v48 = vrot.slane %v1932_v41, 5 }
  0xe1   : > { %947 = vrot.lane.b32.xlu0 %v900_v53, %s2234_s27  ;;  %v1923_v53 = vld [vmem:[%s2337_s10 + $0x5c] sm:$0x1] }
  0xe2   : > { %v1043_v63 = vpop.permute.xlu1 %1042  ;;  %v1201_v57 = vsel %vm2339_vm2, %v1199_v47, %v1200_v48  ;;  %v1967_v47 = vld [vmem:[%s2337_s10 + $0x8c] sm:$0x3] }
  0xe3   : > { %1090 = vst.msk [vmem:[#allocation2 + $0x4] sm:$0xf] %vm1088_vm12, %v1043_v63  ;;  %v1041_v4 = vpop.permute.xlu0 %1040  ;;  %v1198_v63 = vsel %vm2339_vm2, %v1942_v52, %v1197_v38  ;;  %v1953_v38 = vld [vmem:[%s2337_s10 + $0x54] sm:$0xc]  ;;  %v1376_v52 = vrot.slane %v1967_v47, 6 }
  0xe4   : > { %1089 = vst.msk [vmem:[#allocation2] sm:$0xf] %vm1088_vm12, %v1041_v4  ;;  %965 = vrot.lane.b32.xlu1 %v931_v59, %s2234_s27  ;;  %v1179_v59 = vrot.slane %v1923_v53, 5  ;;  %v1933_v4 = vld [vmem:[%s2337_s10 + $0x84] sm:$0xe] }
  0xe5   : > { %963 = vrot.lane.b32.xlu0 %v928_v1, %s2234_s27  ;;  %v1939_v1 = vrot.slane %v1921_v56, 9 }
  0xe6   : > { %v1059_v9 = vpop.permute.xlu1 %1058 }
  0xe7   : > { %1098 = vst.msk [vmem:[#allocation2 + $0x24] sm:$0xf] %vm1088_vm12, %v1059_v9  ;;  %v1057_v12 = vpop.permute.xlu0 %1056  ;;  %v1952_v9 = vld [vmem:[%s2337_s10 + $0x50] sm:$0x3]  ;;  %v1177_v11 = vsel %vm2339_vm2, %v1939_v1, %v1176_v49  ;;  %v1965_v49 = vld [vmem:[%s2337_s10 + $0x84] sm:$0xc] }
  0xe8   : > { %1097 = vst.msk [vmem:[#allocation2 + $0x20] sm:$0xf] %vm1088_vm12, %v1057_v12  ;;  %953 = vrot.lane.b32.xlu1 %v910_v6, %s2234_s27  ;;  %v1180_v6 = vsel %vm2339_vm2, %v1178_v58, %v1179_v59  ;;  %v1943_v12 = vrot.slane %v1933_v4, 9 }
  0xe9   : > { %951 = vrot.lane.b32.xlu0 %v907_v10, %s2234_s27 }
  0xea   : > { %v1047_v14 = vpop.permute.xlu1 %1046 }
  0xeb   : > { %1092 = vst.msk [vmem:[#allocation2 + $0xc] sm:$0xf] %vm1088_vm12, %v1047_v14  ;;  %v1045_v16 = vpop.permute.xlu0 %1044  ;;  %v1963_v14 = vld [vmem:[%s2337_s10 + $0x7c] sm:$0xf] }
  0xec   : > { %1091 = vst.msk [vmem:[#allocation2 + $0x8] sm:$0xf] %vm1088_vm12, %v1045_v16  ;;  %969 = vrot.lane.b32.xlu1 %v938_v13, %s2234_s27  ;;  %v1950_v13 = vld [vmem:[%s2337_s10 + $0x48] sm:$0xc]  ;;  %v1340_v16 = vrot.slane %v1338_v5, 4 }
  0xed   : > { %967 = vrot.lane.b32.xlu0 %v935_v15, %s2234_s27 }
  0xee   : > { %v1063_v18 = vpop.permute.xlu1 %1062 }
  0xef   : > { %1100 = vst.msk [vmem:[#allocation2 + $0x2c] sm:$0xf] %vm1088_vm12, %v1063_v18  ;;  %v1061_v20 = vpop.permute.xlu0 %1060  ;;  %v1208_v18 = vsel %vm2339_vm2, %v1206_v7, %v1207_v8 }
  0xf0   : > { %1099 = vst.msk [vmem:[#allocation2 + $0x28] sm:$0xf] %vm1088_vm12, %v1061_v20  ;;  %1050 = vrot.lane.b32.xlu1 %v1901_v17, %s2235_s28  ;;  %v1341_v17 = vrot.slane %v1952_v9, 6  ;;  %v1964_v20 = vld [vmem:[%s2337_s10 + $0x80] sm:$0x3] }
  0xf1   : > { %1048 = vrot.lane.b32.xlu0 %v1900_v19, %s2235_s28  ;;  %v1970_v19 = vrot.slane %v1950_v13, 10 }
  0xf2   : > { %v1212_v22 = vpop.permute.xlu1 %1211 }
  0xf3   : > { %1259 = vst.msk [vmem:[#allocation2 + $0x4] sm:$0xf] %vm1257_vm13, %v1212_v22  ;;  %v1210_v25 = vpop.permute.xlu0 %1209  ;;  %v1339_v33 = vsel %vm2382_vm5, %v1970_v19, %v1338_v5 }
  0xf4   : > { %1258 = vst.msk [vmem:[#allocation2] sm:$0xf] %vm1257_vm13, %v1210_v25  ;;  %1066 = vrot.lane.b32.xlu1 %v1909_v21, %s2235_s28  ;;  %v1366_v21 = vrot.slane %v1963_v14, 6  ;;  %v1954_v25 = vld [vmem:[%s2337_s10 + $0x58] sm:$0xf] }
  0xf5   : > { %1064 = vrot.lane.b32.xlu0 %v1908_v23, %s2235_s28  ;;  %v1205_v23 = vsel %vm2339_vm2, %v1943_v12, %v1204_v60  ;;  %v1345_v31 = vrot.slane %v1954_v25, 6 }
  0xf6   : > { %v1228_v28 = vpop.permute.xlu1 %1227  ;;  %v1368_v0 = vrot.slane %v1366_v21, 4  ;;  %v1367_v44 = vsel %vm2382_vm5, %v1974_v30, %v1366_v21 }
  0xf7   : > { %1267 = vst.msk [vmem:[#allocation2 + $0x24] sm:$0xf] %vm1257_vm13, %v1228_v28  ;;  %v1226_v32 = vpop.permute.xlu0 %1225  ;;  %v1342_v28 = vsel %vm2382_vm5, %v1340_v16, %v1341_v17  ;;  %v1347_v40 = vrot.slane %v1345_v31, 4 }
  0xf8   : > { %1266 = vst.msk [vmem:[#allocation2 + $0x20] sm:$0xf] %vm1257_vm13, %v1226_v32  ;;  %1054 = vrot.lane.b32.xlu1 %v1903_v26, %s2235_s28 }
  0xf9   : > { %1052 = vrot.lane.b32.xlu0 %v1902_v29, %s2235_s28  ;;  %v1369_v29 = vrot.slane %v1964_v20, 6 }
  0xfa   : > { %v1216_v39 = vpop.permute.xlu1 %1215 }
  0xfb   : > { %1261 = vst.msk [vmem:[#allocation2 + $0xc] sm:$0xf] %vm1257_vm13, %v1216_v39  ;;  %v1214_v43 = vpop.permute.xlu0 %1213  ;;  %v1370_v39 = vsel %vm2382_vm5, %v1368_v0, %v1369_v29 }
  0xfc   : > { %1260 = vst.msk [vmem:[#allocation2 + $0x8] sm:$0xf] %vm1257_vm13, %v1214_v43  ;;  %1070 = vrot.lane.b32.xlu1 %v1911_v34, %s2235_s28  ;;  %v1955_v34 = vld [vmem:[%s2337_s10 + $0x5c] sm:$0x3] }
  0xfd   : > { %1068 = vrot.lane.b32.xlu0 %v1910_v35, %s2235_s28  ;;  %v1966_v35 = vld [vmem:[%s2337_s10 + $0x88] sm:$0xf]  ;;  %v1348_v41 = vrot.slane %v1955_v34, 6  ;;  %s175_s10 = sand.u32 1, %s2204_s13   ;;  %s1997_s28 = sshll.u32 %s2212_s15, 4 }
  0xfe   : > { %v1232_v50 = vpop.permute.xlu1 %1231  ;;  %v1373_v42 = vrot.slane %v1966_v35, 6  ;;  %s1791_s24 = sshll.u32 %s175_s10, 7  ;;  %s3084_s9 = scalar_lea.sflag [#allocation4], %s175_s10 }
  0xff   : > { %1269 = vst.msk [vmem:[#allocation2 + $0x2c] sm:$0xf] %vm1257_vm13, %v1232_v50  ;;  %v1230_v55 = vpop.permute.xlu0 %1229  ;;  %v1349_v50 = vsel %vm2382_vm5, %v1347_v40, %v1348_v41  ;;  %s3040_s27 = scalar_lea.vmem [#allocation3], %s1791_s24  ;;  %s2142_s24 = scalar_lea.vmem %s2141_s21, 4096 }
 0x100   : > { %1268 = vst.msk [vmem:[#allocation2 + $0x28] sm:$0xf] %vm1257_vm13, %v1230_v55  ;;  %1219 = vrot.lane.b32.xlu1 %v1173_v46, %s2236_s29  ;;  %v1971_v46 = vrot.slane %v1953_v38, 10  ;;  %v1975_v55 = vrot.slane %v1965_v49, 10 }
 0x101   : > { %1217 = vrot.lane.b32.xlu0 %v1170_v51, %s2236_s29  ;;  %v1375_v51 = vrot.slane %v1373_v42, 4 }
 0x102   : > { %v1381_v62 = vpop.permute.xlu1 %1380  ;;  %v1346_v54 = vsel %vm2382_vm5, %v1971_v46, %v1345_v31  ;;  %v1374_v59 = vsel %vm2382_vm5, %v1975_v55, %v1373_v42 }
 0x103   : > { %1428 = vst.msk [vmem:[#allocation2 + $0x4] sm:$0xf] %vm1426_vm14, %v1381_v62  ;;  %v1379_v3 = vpop.permute.xlu0 %1378 }
 0x104   : > { %1427 = vst.msk [vmem:[#allocation2] sm:$0xf] %vm1426_vm14, %v1379_v3  ;;  %1235 = vrot.lane.b32.xlu1 %v1201_v57, %s2236_s29  ;;  %v1377_v57 = vsel %vm2382_vm5, %v1375_v51, %v1376_v52 }
 0x105   : > { %1233 = vrot.lane.b32.xlu0 %v1198_v63, %s2236_s29 }
 0x106   : > { %v1397_v10 = vpop.permute.xlu1 %1396 }
 0x107   : > { %1436 = vst.msk [vmem:[#allocation2 + $0x24] sm:$0xf] %vm1426_vm14, %v1397_v10  ;;  %v1395_v15 = vpop.permute.xlu0 %1394 }
 0x108   : > { %1435 = vst.msk [vmem:[#allocation2 + $0x20] sm:$0xf] %vm1426_vm14, %v1395_v15  ;;  %1223 = vrot.lane.b32.xlu1 %v1180_v6, %s2236_s29 }
 0x109   : > { %1221 = vrot.lane.b32.xlu0 %v1177_v11, %s2236_s29 }
 0x10a   : > { %v339_v22 = vpop.permute.xlu1 %338 }
 0x10b   : > { %382 = vst.msk [vmem:[#allocation2 + $0x14] sm:$0xf] %vm376_vm7, %v339_v22  ;;  %v337_v26 = vpop.permute.xlu0 %336  ;;  %v2125_v27 = vld [vmem:[#allocation2] sm:$0xff]  }
 0x10c   : > { %381 = vst.msk [vmem:[#allocation2 + $0x10] sm:$0xf] %vm376_vm7, %v337_v26  ;;  %1239 = vrot.lane.b32.xlu1 %v1208_v18, %s2236_s29  ;;  %2020 = vmatprep.mubr.msk.bf16.mxu0 %vm1526_vm15, %v2125_v27 }
 0x10d   : > { %1237 = vrot.lane.b32.xlu0 %v1205_v23, %s2236_s29  ;;  %s1998_s29 = sshll.u32 %s2216_s16, 5  ;;  %s1700_s16 = sshll.u32 %s3040_s27, 4  ;;  %s3079_s16 = int_to_ptr.vmem [resolvable:$true] %s1700_s16 }
 0x10e   : > { %v355_v32 = vpop.permute.xlu1 %354  ;;  %s1697_s5 = sadd.s32 %s1998_s29, %s1997_s28  ;;  %s2136_s4 = scalar_lea.vmem %s3079_s16, 2048 }
 0x10f   : > { %390 = vst.msk [vmem:[#allocation2 + $0x34] sm:$0xf] %vm376_vm7, %v355_v32  ;;  %v353_v36 = vpop.permute.xlu0 %352  ;;  %v2127_v37 = vld [vmem:[#allocation2 + $0x20] sm:$0xff]   ;;  %s1999_s15 = sshll.u32 %s1697_s5, 7  ;;  %p2137_p13 = scmp.ne.s32.totalorder %s3079_s16, %s2136_s4 }
 0x110   : > { %389 = vst.msk [vmem:[#allocation2 + $0x30] sm:$0xf] %vm376_vm7, %v353_v36  ;;  %1388 = vrot.lane.b32.xlu1 %v1342_v28, %s2237_s6  ;;  %2028 = vmatprep.mubr.msk.bf16.mxu1 %vm1526_vm15, %v2127_v37  ;;  %s3076_s8 = scalar_lea.hbm %s3139_s3, %s1999_s15  ;;  %p2143_p2 = scmp.lt.s32.totalorder %s3079_s16, %s2141_s21 }
 0x111   : > { %1386 = vrot.lane.b32.xlu0 %v1339_v33, %s2237_s6  ;;  %p2138_p0 = pnand %p2137_p13, %p2311_p3  ;;  %p2144_p4 = scmp.lt.s32.totalorder %s2142_s24, %s2136_s4 }
 0x112   : > { %v1385_v43 = vpop.permute.xlu1 %1384 }
 0x113   : > { %1430 = vst.msk [vmem:[#allocation2 + $0xc] sm:$0xf] %vm1426_vm14, %v1385_v43  ;;  %v1383_v48 = vpop.permute.xlu0 %1382  ;;  %p2139_p1 = pneg %p2138_p0  ;;  %p2145_p5 = por %p2144_p4, %p2143_p2 }
 0x114   : > { %1429 = vst.msk [vmem:[#allocation2 + $0x8] sm:$0xf] %vm1426_vm14, %v1383_v48  ;;  %1404 = vrot.lane.b32.xlu1 %v1370_v39, %s2237_s6 }
 0x115   : > { %1402 = vrot.lane.b32.xlu0 %v1367_v44, %s2237_s6  ;;  %p2146_p6 = pnand %p2145_p5, %p2139_p1 }
 0x116   : > { %v1401_v53 = vpop.permute.xlu1 %1400 }
 0x117   : > { %1438 = vst.msk [vmem:[#allocation2 + $0x2c] sm:$0xf] %vm1426_vm14, %v1401_v53  ;;  %v1399_v56 = vpop.permute.xlu0 %1398 }
 0x118   : > { %1437 = vst.msk [vmem:[#allocation2 + $0x28] sm:$0xf] %vm1426_vm14, %v1399_v56  ;;  %1392 = vrot.lane.b32.xlu1 %v1349_v50, %s2237_s6 }
 0x119   : > { %1390 = vrot.lane.b32.xlu0 %v1346_v54, %s2237_s6 }
 0x11a   : > { %v343_v58 = vpop.permute.xlu1 %342 }
 0x11b   : > { %384 = vst.msk [vmem:[#allocation2 + $0x1c] sm:$0xf] %vm376_vm7, %v343_v58  ;;  %v341_v60 = vpop.permute.xlu0 %340  ;;  %v2130_v61 = vld [vmem:[#allocation2 + $0x8] sm:$0xff]  }
 0x11c   : > { %383 = vst.msk [vmem:[#allocation2 + $0x18] sm:$0xf] %vm376_vm7, %v341_v60  ;;  %1408 = vrot.lane.b32.xlu1 %v1377_v57, %s2237_s6  ;;  %2021 = vmatmul.mubr.msk.bf16.vlgmr.msra.gmra.mxu0 %vm1526_vm15, %v2130_v61  ;;  %v3034_v61 = vld [vmem:[%s3138_s2] ss:$0 sm:$0xff] }
 0x11d   : > { %1406 = vrot.lane.b32.xlu0 %v1374_v59, %s2237_s6 }
 0x11e   : > { %v359_v62 = vpop.permute.xlu1 %358 }
 0x11f   : > { %392 = vst.msk [vmem:[#allocation2 + $0x3c] sm:$0xf] %vm376_vm7, %v359_v62  ;;  %v357_v63 = vpop.permute.xlu0 %356  ;;  %v2131_v1 = vld [vmem:[#allocation2 + $0x28] sm:$0xff]  }
 0x120   : > { %391 = vst.msk [vmem:[#allocation2 + $0x38] sm:$0xf] %vm376_vm7, %v357_v63  ;;  %2029 = vmatmul.mubr.msk.bf16.vlgmr.msra.gmra.mxu1 %vm1526_vm15, %v2131_v1 }
 0x122   : > { %v511_v45 = vpop.permute.xlu1 %510 }
 0x123   : > { %554 = vst.msk [vmem:[#allocation2 + $0x14] sm:$0xf] %vm548_vm8, %v511_v45  ;;  %v509_v2 = vpop.permute.xlu0 %508 }
 0x124   : > { %553 = vst.msk [vmem:[#allocation2 + $0x10] sm:$0xf] %vm548_vm8, %v509_v2 }
 0x126   : > { %v527_v3 = vpop.permute.xlu1 %526 }
 0x127   : > { %562 = vst.msk [vmem:[#allocation2 + $0x34] sm:$0xf] %vm548_vm8, %v527_v3  ;;  %v525_v4 = vpop.permute.xlu0 %524 }
 0x128   : > { %561 = vst.msk [vmem:[#allocation2 + $0x30] sm:$0xf] %vm548_vm8, %v525_v4 }
 0x12a   : > { %v515_v5 = vpop.permute.xlu1 %514 }
 0x12b   : > { %556 = vst.msk [vmem:[#allocation2 + $0x1c] sm:$0xf] %vm548_vm8, %v515_v5  ;;  %v513_v6 = vpop.permute.xlu0 %512 }
 0x12c   : > { %555 = vst.msk [vmem:[#allocation2 + $0x18] sm:$0xf] %vm548_vm8, %v513_v6 }
 0x12e   : > { %v531_v7 = vpop.permute.xlu1 %530 }
 0x12f   : > { %564 = vst.msk [vmem:[#allocation2 + $0x3c] sm:$0xf] %vm548_vm8, %v531_v7  ;;  %v529_v8 = vpop.permute.xlu0 %528 }
 0x130   : > { %563 = vst.msk [vmem:[#allocation2 + $0x38] sm:$0xf] %vm548_vm8, %v529_v8 }
 0x132   : > { %v612_v9 = vpop.permute.xlu1 %611 }
 0x133   : > { %655 = vst.msk [vmem:[#allocation2 + $0x14] sm:$0xf] %vm649_vm9, %v612_v9  ;;  %v610_v10 = vpop.permute.xlu0 %609 }
 0x134   : > { %654 = vst.msk [vmem:[#allocation2 + $0x10] sm:$0xf] %vm649_vm9, %v610_v10 }
 0x136   : > { %v628_v11 = vpop.permute.xlu1 %627 }
 0x137   : > { %663 = vst.msk [vmem:[#allocation2 + $0x34] sm:$0xf] %vm649_vm9, %v628_v11  ;;  %v626_v12 = vpop.permute.xlu0 %625 }
 0x138   : > { %662 = vst.msk [vmem:[#allocation2 + $0x30] sm:$0xf] %vm649_vm9, %v626_v12 }
 0x13a   : > { %v616_v13 = vpop.permute.xlu1 %615 }
 0x13b   : > { %657 = vst.msk [vmem:[#allocation2 + $0x1c] sm:$0xf] %vm649_vm9, %v616_v13  ;;  %v614_v14 = vpop.permute.xlu0 %613 }
 0x13c   : > { %656 = vst.msk [vmem:[#allocation2 + $0x18] sm:$0xf] %vm649_vm9, %v614_v14 }
 0x13e   : > { %v632_v15 = vpop.permute.xlu1 %631 }
 0x13f   : > { %665 = vst.msk [vmem:[#allocation2 + $0x3c] sm:$0xf] %vm649_vm9, %v632_v15  ;;  %v630_v16 = vpop.permute.xlu0 %629 }
 0x140   : > { %664 = vst.msk [vmem:[#allocation2 + $0x38] sm:$0xf] %vm649_vm9, %v630_v16 }
 0x142   : > { %v781_v17 = vpop.permute.xlu1 %780 }
 0x143   : > { %824 = vst.msk [vmem:[#allocation2 + $0x14] sm:$0xf] %vm818_vm10, %v781_v17  ;;  %v779_v18 = vpop.permute.xlu0 %778 }
 0x144   : > { %823 = vst.msk [vmem:[#allocation2 + $0x10] sm:$0xf] %vm818_vm10, %v779_v18 }
 0x146   : > { %v797_v19 = vpop.permute.xlu1 %796 }
 0x147   : > { %832 = vst.msk [vmem:[#allocation2 + $0x34] sm:$0xf] %vm818_vm10, %v797_v19  ;;  %v795_v20 = vpop.permute.xlu0 %794 }
 0x148   : > { %831 = vst.msk [vmem:[#allocation2 + $0x30] sm:$0xf] %vm818_vm10, %v795_v20 }
 0x14a   : > { %v785_v21 = vpop.permute.xlu1 %784 }
 0x14b   : > { %826 = vst.msk [vmem:[#allocation2 + $0x1c] sm:$0xf] %vm818_vm10, %v785_v21  ;;  %v783_v22 = vpop.permute.xlu0 %782 }
 0x14c   : > { %825 = vst.msk [vmem:[#allocation2 + $0x18] sm:$0xf] %vm818_vm10, %v783_v22 }
 0x14e   : > { %v801_v23 = vpop.permute.xlu1 %800 }
 0x14f   : > { %834 = vst.msk [vmem:[#allocation2 + $0x3c] sm:$0xf] %vm818_vm10, %v801_v23  ;;  %v799_v24 = vpop.permute.xlu0 %798 }
 0x150   : > { %833 = vst.msk [vmem:[#allocation2 + $0x38] sm:$0xf] %vm818_vm10, %v799_v24 }
 0x152   : > { %v950_v25 = vpop.permute.xlu1 %949 }
 0x153   : > { %993 = vst.msk [vmem:[#allocation2 + $0x14] sm:$0xf] %vm987_vm11, %v950_v25  ;;  %v948_v26 = vpop.permute.xlu0 %947 }
 0x154   : > { %992 = vst.msk [vmem:[#allocation2 + $0x10] sm:$0xf] %vm987_vm11, %v948_v26 }
 0x156   : > { %v966_v27 = vpop.permute.xlu1 %965 }
 0x157   : > { %1001 = vst.msk [vmem:[#allocation2 + $0x34] sm:$0xf] %vm987_vm11, %v966_v27  ;;  %v964_v28 = vpop.permute.xlu0 %963 }
 0x158   : > { %1000 = vst.msk [vmem:[#allocation2 + $0x30] sm:$0xf] %vm987_vm11, %v964_v28 }
 0x15a   : > { %v954_v0 = vpop.permute.xlu1 %953 }
 0x15b   : > { %995 = vst.msk [vmem:[#allocation2 + $0x1c] sm:$0xf] %vm987_vm11, %v954_v0  ;;  %v952_v29 = vpop.permute.xlu0 %951 }
 0x15c   : > { %994 = vst.msk [vmem:[#allocation2 + $0x18] sm:$0xf] %vm987_vm11, %v952_v29 }
 0x15e   : > { %v970_v30 = vpop.permute.xlu1 %969 }
 0x15f   : > { %1003 = vst.msk [vmem:[#allocation2 + $0x3c] sm:$0xf] %vm987_vm11, %v970_v30  ;;  %v968_v31 = vpop.permute.xlu0 %967 }
 0x160   : > { %1002 = vst.msk [vmem:[#allocation2 + $0x38] sm:$0xf] %vm987_vm11, %v968_v31 }
 0x162   : > { %v1051_v32 = vpop.permute.xlu1 %1050 }
 0x163   : > { %1094 = vst.msk [vmem:[#allocation2 + $0x14] sm:$0xf] %vm1088_vm12, %v1051_v32  ;;  %v1049_v33 = vpop.permute.xlu0 %1048 }
 0x164   : > { %1093 = vst.msk [vmem:[#allocation2 + $0x10] sm:$0xf] %vm1088_vm12, %v1049_v33 }
 0x166   : > { %v1067_v34 = vpop.permute.xlu1 %1066 }
 0x167   : > { %1102 = vst.msk [vmem:[#allocation2 + $0x34] sm:$0xf] %vm1088_vm12, %v1067_v34  ;;  %v1065_v35 = vpop.permute.xlu0 %1064 }
 0x168   : > { %1101 = vst.msk [vmem:[#allocation2 + $0x30] sm:$0xf] %vm1088_vm12, %v1065_v35 }
 0x16a   : > { %v1055_v36 = vpop.permute.xlu1 %1054 }
 0x16b   : > { %1096 = vst.msk [vmem:[#allocation2 + $0x1c] sm:$0xf] %vm1088_vm12, %v1055_v36  ;;  %v1053_v37 = vpop.permute.xlu0 %1052 }
 0x16c   : > { %1095 = vst.msk [vmem:[#allocation2 + $0x18] sm:$0xf] %vm1088_vm12, %v1053_v37 }
 0x16e   : > { %v1071_v38 = vpop.permute.xlu1 %1070 }
 0x16f   : > { %1104 = vst.msk [vmem:[#allocation2 + $0x3c] sm:$0xf] %vm1088_vm12, %v1071_v38  ;;  %v1069_v39 = vpop.permute.xlu0 %1068 }
 0x170   : > { %1103 = vst.msk [vmem:[#allocation2 + $0x38] sm:$0xf] %vm1088_vm12, %v1069_v39 }
 0x172   : > { %v1220_v40 = vpop.permute.xlu1 %1219 }
 0x173   : > { %1263 = vst.msk [vmem:[#allocation2 + $0x14] sm:$0xf] %vm1257_vm13, %v1220_v40  ;;  %v1218_v41 = vpop.permute.xlu0 %1217 }
 0x174   : > { %1262 = vst.msk [vmem:[#allocation2 + $0x10] sm:$0xf] %vm1257_vm13, %v1218_v41 }
 0x176   : > { %v1236_v42 = vpop.permute.xlu1 %1235 }
 0x177   : > { %1271 = vst.msk [vmem:[#allocation2 + $0x34] sm:$0xf] %vm1257_vm13, %v1236_v42  ;;  %v1234_v43 = vpop.permute.xlu0 %1233 }
 0x178   : > { %1270 = vst.msk [vmem:[#allocation2 + $0x30] sm:$0xf] %vm1257_vm13, %v1234_v43 }
 0x17a   : > { %v1224_v44 = vpop.permute.xlu1 %1223 }
 0x17b   : > { %1265 = vst.msk [vmem:[#allocation2 + $0x1c] sm:$0xf] %vm1257_vm13, %v1224_v44  ;;  %v1222_v46 = vpop.permute.xlu0 %1221 }
 0x17c   : > { %1264 = vst.msk [vmem:[#allocation2 + $0x18] sm:$0xf] %vm1257_vm13, %v1222_v46 }
 0x17e   : > { %v1240_v47 = vpop.permute.xlu1 %1239 }
 0x17f   : > { %1273 = vst.msk [vmem:[#allocation2 + $0x3c] sm:$0xf] %vm1257_vm13, %v1240_v47  ;;  %v1238_v48 = vpop.permute.xlu0 %1237 }
 0x180   : > { %1272 = vst.msk [vmem:[#allocation2 + $0x38] sm:$0xf] %vm1257_vm13, %v1238_v48 }
 0x182   : > { %v1389_v49 = vpop.permute.xlu1 %1388 }
 0x183   : > { %1432 = vst.msk [vmem:[#allocation2 + $0x14] sm:$0xf] %vm1426_vm14, %v1389_v49  ;;  %v1387_v50 = vpop.permute.xlu0 %1386 }
 0x184   : > { %1431 = vst.msk [vmem:[#allocation2 + $0x10] sm:$0xf] %vm1426_vm14, %v1387_v50 }
 0x186   : > { %v1405_v51 = vpop.permute.xlu1 %1404 }
 0x187   : > { %1440 = vst.msk [vmem:[#allocation2 + $0x34] sm:$0xf] %vm1426_vm14, %v1405_v51  ;;  %v1403_v52 = vpop.permute.xlu0 %1402 }
 0x188   : > { %1439 = vst.msk [vmem:[#allocation2 + $0x30] sm:$0xf] %vm1426_vm14, %v1403_v52 }
 0x18a   : > { %v1393_v53 = vpop.permute.xlu1 %1392 }
 0x18b   : > { %1434 = vst.msk [vmem:[#allocation2 + $0x1c] sm:$0xf] %vm1426_vm14, %v1393_v53  ;;  %v1391_v54 = vpop.permute.xlu0 %1390  ;;  %v2132_v55 = vld [vmem:[#allocation2 + $0x10] sm:$0xff]  }
 0x18c   : > { %1433 = vst.msk [vmem:[#allocation2 + $0x18] sm:$0xf] %vm1426_vm14, %v1391_v54  ;;  %2024 = vmatprep.mubr.msk.bf16.mxu0 %vm1526_vm15, %v2132_v55 }
 0x18e   : > { %v1409_v56 = vpop.permute.xlu1 %1408 }
 0x18f   : > { %1442 = vst.msk [vmem:[#allocation2 + $0x3c] sm:$0xf] %vm1426_vm14, %v1409_v56  ;;  %v1407_v57 = vpop.permute.xlu0 %1406  ;;  %v2133_v58 = vld [vmem:[#allocation2 + $0x30] sm:$0xff]  }
 0x190   : > { %1441 = vst.msk [vmem:[#allocation2 + $0x38] sm:$0xf] %vm1426_vm14, %v1407_v57  ;;  %2032 = vmatprep.mubr.msk.bf16.mxu1 %vm1526_vm15, %v2133_v58 }
 0x193   : > { %v2134_v59 = vld [vmem:[#allocation2 + $0x18] sm:$0xff]  }
 0x194   : > { %2025 = vmatmul.mubr.msk.bf16.gmra.mxu0 %vm1526_vm15, %v2134_v59 }
 0x197   : > { %v2135_v60 = vld [vmem:[#allocation2 + $0x38] sm:$0xff]  }
 0x198   : > { %2033 = vmatmul.mubr.msk.bf16.gmra.mxu1 %vm1526_vm15, %v2135_v60 }
 0x1dc   : > { %v2022_v62 = vpop.f32.mrf.mxu0 }
 0x1dd   : > { %v1598_v63 = vadd.f32 %v2022_v62, %v3034_v61 }
 0x1de   : > { %v1589_v1 = vpop.f32.mrf.mxu0 }
 0x1df   : > { %v1654_v45 = vmax.f32 %v1598_v63, 0.0  ;;  %v1590_v2 = vadd.f32 %v3034_v61, %v1589_v1 }
 0x1e0   : > { %v2023_v3 = vpop.f32.mrf.mxu0  ;;  %v2030_v4 = vpop.f32.mrf.mxu1 }
 0x1e1   : > { %1670 = vst [vmem:[%s3040_s27 + $0x10] sm:$0xff] %v1654_v45  ;;  %v1652_v5 = vmax.f32 %v1590_v2, 0.0  ;;  %v1601_v6 = vadd.f32 %v2023_v3, %v3034_v61  ;;  %v1630_v7 = vadd.f32 %v2030_v4, %v3034_v61 }
 0x1e2   : > { %v1592_v8 = vpop.f32.mrf.mxu0  ;;  %v1621_v9 = vpop.f32.mrf.mxu1 }
 0x1e3   : > { %1668 = vst [vmem:[%s3040_s27] sm:$0xff] %v1652_v5  ;;  %v1655_v10 = vmax.f32 %v1601_v6, 0.0  ;;  %v1662_v11 = vmax.f32 %v1630_v7, 0.0  ;;  %v1593_v12 = vadd.f32 %v3034_v61, %v1592_v8  ;;  %v1622_v13 = vadd.f32 %v3034_v61, %v1621_v9 }
 0x1e4   : > { %v2031_v14 = vpop.f32.mrf.mxu1 }
 0x1e5   : > { %1671 = vst [vmem:[%s3040_s27 + $0x18] sm:$0xff] %v1655_v10  ;;  %1678 = vst [vmem:[%s3040_s27 + $0x50] sm:$0xff] %v1662_v11  ;;  %v1653_v15 = vmax.f32 %v1593_v12, 0.0  ;;  %v1660_v16 = vmax.f32 %v1622_v13, 0.0  ;;  %v1633_v17 = vadd.f32 %v2031_v14, %v3034_v61 }
 0x1e6   : > { %v1624_v18 = vpop.f32.mrf.mxu1 }
 0x1e7   : > { %1669 = vst [vmem:[%s3040_s27 + $0x8] sm:$0xff] %v1653_v15  ;;  %1676 = vst [vmem:[%s3040_s27 + $0x40] sm:$0xff] %v1660_v16  ;;  %v1663_v19 = vmax.f32 %v1633_v17, 0.0  ;;  %v1625_v20 = vadd.f32 %v3034_v61, %v1624_v18 }
 0x1e9   : > { %1679 = vst [vmem:[%s3040_s27 + $0x58] sm:$0xff] %v1663_v19  ;;  %v1661_v21 = vmax.f32 %v1625_v20, 0.0 }
 0x1eb   : > { %1677 = vst [vmem:[%s3040_s27 + $0x48] sm:$0xff] %v1661_v21 }
 0x254   : > { %v2026_v22 = vpop.f32.mrf.mxu0 }
 0x255   : > { %v1614_v23 = vadd.f32 %v2026_v22, %v3034_v61 }
 0x256   : > { %v1605_v24 = vpop.f32.mrf.mxu0 }
 0x257   : > { %v1658_v25 = vmax.f32 %v1614_v23, 0.0  ;;  %v1606_v26 = vadd.f32 %v3034_v61, %v1605_v24 }
 0x258   : > { %v2027_v27 = vpop.f32.mrf.mxu0  ;;  %v2034_v28 = vpop.f32.mrf.mxu1 }
 0x259   : > { %1674 = vst [vmem:[%s3040_s27 + $0x30] sm:$0xff] %v1658_v25  ;;  %v1656_v0 = vmax.f32 %v1606_v26, 0.0  ;;  %v1617_v29 = vadd.f32 %v2027_v27, %v3034_v61  ;;  %v1646_v30 = vadd.f32 %v2034_v28, %v3034_v61 }
 0x25a   : > { %v1608_v31 = vpop.f32.mrf.mxu0  ;;  %v1637_v32 = vpop.f32.mrf.mxu1 }
 0x25b   : > { %1672 = vst [vmem:[%s3040_s27 + $0x20] sm:$0xff] %v1656_v0  ;;  %v1659_v33 = vmax.f32 %v1617_v29, 0.0  ;;  %v1666_v34 = vmax.f32 %v1646_v30, 0.0  ;;  %v1609_v35 = vadd.f32 %v3034_v61, %v1608_v31  ;;  %v1638_v36 = vadd.f32 %v3034_v61, %v1637_v32 }
 0x25c   : > { %v2035_v37 = vpop.f32.mrf.mxu1 }
 0x25d   : > { %1675 = vst [vmem:[%s3040_s27 + $0x38] sm:$0xff] %v1659_v33  ;;  %1682 = vst [vmem:[%s3040_s27 + $0x70] sm:$0xff] %v1666_v34  ;;  %v1657_v38 = vmax.f32 %v1609_v35, 0.0  ;;  %v1664_v39 = vmax.f32 %v1638_v36, 0.0  ;;  %v1649_v40 = vadd.f32 %v2035_v37, %v3034_v61 }
 0x25e   : > { %v1640_v41 = vpop.f32.mrf.mxu1 }
 0x25f   : > { %1673 = vst [vmem:[%s3040_s27 + $0x28] sm:$0xff] %v1657_v38  ;;  %1680 = vst [vmem:[%s3040_s27 + $0x60] sm:$0xff] %v1664_v39  ;;  %v1667_v42 = vmax.f32 %v1649_v40, 0.0  ;;  %v1641_v43 = vadd.f32 %v3034_v61, %v1640_v41 }
 0x261   : > { %1683 = vst [vmem:[%s3040_s27 + $0x78] sm:$0xff] %v1667_v42  ;;  %v1665_v44 = vmax.f32 %v1641_v43, 0.0 }
 0x263   : > { %1681 = vst [vmem:[%s3040_s27 + $0x68] sm:$0xff] %v1665_v44 }
 0x264   : > { %2149 = shalt.err (!%p2146_p6)
}
 0x265   : > { %s2150_s10 = scalar_lea.hbm %s3076_s8, 2048  ;;  %s2154_s29 = scalar_lea.hbm %s3139_s3, 8192 }
 0x266   : > { %p2151_p7 = scmp.ne.s32.totalorder %s3076_s8, %s2150_s10  ;;  %p2155_p11 = scmp.lt.s32.totalorder %s3076_s8, %s3139_s3 }
 0x267   : > { %p2156_p12 = scmp.lt.s32.totalorder %s2154_s29, %s2150_s10 }
 0x268   : > { %p2152_p9 = pnand %p2151_p7, %p2311_p3 }
 0x269   : > { %p2157_p13 = por %p2156_p12, %p2155_p11 }
 0x26a   : > { %p2153_p10 = pneg %p2152_p9 }
 0x26c   : > { %p2158_p0 = pnand %p2157_p13, %p2153_p10 }
 0x26e   : > { %2161 = shalt.err (!%p2158_p0)
}
 0x26f   : > { %s2239_s6 = smov 128  }
 0x270   : > { %2045 = dma.vmem_to_hbm [thread:$0]  (%p2311_p3), %s3079_s16, 2048, %s3076_s8, %s3084_s9, %s2239_s6, %s2239_s6, %s2231_s20  }
 0x271 PF: > { %p2051_p1 = scmp.ge.s32.totalorder %s2228_s19, 2  ;;  %s1715_s7 = sand.u32 1, %s2200_s12  }
 0x272   : > { %s1716_s4 = scalar_lea.sflag [#allocation4], %s1715_s7 }
 0x273   : > { %p2048_p2 = pnand %p2051_p1, %p2320_p8 }
 0x275   : > { %p2049_p4 = pneg %p2048_p2 }
 0x277   : > { %2195 = dma.done.wait (%p2049_p4), %s1716_s4, 2048  }
 0x278   : > { %2197 = vsyncadd (%p2049_p4), %s1716_s4, 4294965248  ;;  %s16_s19 = sadd.s32 1, %s2228_s19   ;;  %s3146_s12 = smov %s2204_s13 }
 0x279   : > { %p13_p5 = scmp.ge.s32.totalorder %s16_s19, 6   ;;  %s3147_s13 = smov %s2208_s14 }
 0x27a   : > { %s3148_s14 = smov %s2329_s30  ;;  %s3149_s15 = smov %s2220_s17 }
 0x27b   : > { %s3150_s16 = smov %s2224_s18  ;;  %s3151_s17 = smov %s3154_s22 }
 0x27c   : > { %s3152_s18 = smov %s3158_s23  ;;  %15 = sbr.rel (!%p13_p5) target bundleno = 5 (0x5), region = 70 }
 0x281   :  { %1721 = vsyncpa [#allocation4], 1 }
 0x282   :  { %1723 = vsyncpa [#allocation4 + $0x1], 1 }

</bundles_post_ra>
